<compile_context>
chip_gen: v6e
topology: v6e:2x2x1
jax: 0.10.0
libtpu: 0.0.40
codegen_flags: <defaults>
</compile_context>

<pallas_src>
import functools

import jax
import jax.numpy as jnp
from jax.experimental import pallas as pl
from jax.experimental.pallas import tpu as pltpu

NEG_SLOPE = 1.0  # nn.LeakyReLU(negative_slope=1)


def _default_vmem_limit():
    # v5e/v6e: 128 MiB physical VMEM -> use up to 96 MiB; v7x: 64 MiB -> ~48.
    try:
        cap = int(pltpu.get_tpu_info().vmem_capacity_bytes)
    except Exception:  # pragma: no cover - conservative fallback
        cap = 64 * 1024 * 1024
    return int(min(96 * 1024 * 1024, (cap * 3) // 4))


_VMEM_LIMIT = _default_vmem_limit()


def _act(h):
    # LeakyReLU with slope==1 is the identity; keep the general form behind a
    # compile-time constant so slope != 1 still works.
    if NEG_SLOPE == 1.0:
        return h
    return jnp.where(h >= 0, h, NEG_SLOPE * h)


def _round_up(n, m):
    return ((n + m - 1) // m) * m


def _pick_tile(n, target, min_tiles=1):
    """n is a multiple of 128; return the largest multiple of 128 dividing n
    that is <= target and (when possible) leaves at least `min_tiles` tiles
    so the 'parallel' grid axis can feed both v7x TensorCores."""
    cap = n
    if min_tiles > 1 and n >= min_tiles * 128:
        cap = (n // min_tiles) // 128 * 128
    t = max(128, min(n, target, cap) // 128 * 128)
    while n % t:
        t -= 128
    return t


# --------------------------------------------------------------------------
# Pallas kernels
# --------------------------------------------------------------------------
def _sage_kernel(a_ref, xk_ref, xi_ref, invd_ref, wr_ref, wl_ref, b_ref,
                 out_ref, agg_ref):
    """One SAGE conv layer, tiled over (row tile i, K tile k).

    agg  = sum_k A[i, k] @ x[k]               (fp32 VMEM accumulator)
    out  = act( x_i @ W_r^T + (agg * inv_deg_i) @ W_l^T + b )   (bf16 store)
    """
    k = pl.program_id(1)

    @pl.when(k == 0)
    def _():
        agg_ref[...] = jnp.zeros_like(agg_ref)

    # int8 edge counts upcast to bf16 right after the load (VPU cast); the
    # adjacency is the dominant HBM stream so it is stored at 1 B/elem.
    a = a_ref[...].astype(jnp.bfloat16)
    agg_ref[...] += jnp.dot(a, xk_ref[...], preferred_element_type=jnp.float32)

    @pl.when(k == pl.num_programs(1) - 1)
    def _():
        mean_agg = (agg_ref[...] * invd_ref[...]).astype(wl_ref.dtype)
        h = jnp.dot(xi_ref[...], wr_ref[...], preferred_element_type=jnp.float32)
        h = h + jnp.dot(mean_agg, wl_ref[...], preferred_element_type=jnp.float32)
        out_ref[...] = _act(h + b_ref[...]).astype(out_ref.dtype)


def _node_proj_kernel(x_ref, w_ref, out_ref):
    """Node-level projection for fc[0]:  y = x @ [W0_src^T | W0_dst^T]."""
    out_ref[...] = jnp.dot(
        x_ref[...], w_ref[...], preferred_element_type=jnp.float32
    ).astype(out_ref.dtype)


def _edge_fc_kernel(*refs, num_hidden):
    """Fused edge path over an edge-row tile.

    Layer 0 (fc[0]) was computed at node level; its per-edge epilogue
    (src + dst + bias, activation) is fused here, followed by fc[1:] and
    fc_out (no activation on the last layer)."""
    ysrc_ref, ydst_ref, b0_ref = refs[0], refs[1], refs[2]
    out_ref = refs[-1]
    wb = refs[3:-1]
    h = _act(
        ysrc_ref[...].astype(jnp.float32)
        + ydst_ref[...].astype(jnp.float32)
        + b0_ref[...]
    )
    for layer in range(num_hidden):
        w = wb[2 * layer][...]
        b = wb[2 * layer + 1][...]
        h = _act(
            jnp.dot(h.astype(w.dtype), w, preferred_element_type=jnp.float32) + b
        )
    w = wb[2 * num_hidden][...]
    b = wb[2 * num_hidden + 1][...]
    out_ref[...] = (
        jnp.dot(h.astype(w.dtype), w, preferred_element_type=jnp.float32) + b
    )


# --------------------------------------------------------------------------
# Kernel wrappers
# --------------------------------------------------------------------------
def sage_layer(adj_i8, x_bf16, inv_deg, w_r_t, w_l_t, b, *, tm, tk):
    n, c = x_bf16.shape
    out_c = w_r_t.shape[1]
    tm = _pick_tile(n, tm, min_tiles=2)   # keep both TCs busy on v7x
    tk = _pick_tile(n, tk)
    grid = (n // tm, n // tk)
    flops = 2 * n * n * c + 4 * n * c * out_c
    bytes_acc = int(
        n * n * 1                      # A (int8), dominant stream
        + (n // tm) * n * c * 2        # x_k re-read per row tile
        + n * c * 2 + n * 4            # x_i, 1/deg
        + 2 * c * out_c * 2            # weights
        + n * out_c * 2                # bf16 output
    )
    return pl.pallas_call(
        _sage_kernel,
        out_shape=jax.ShapeDtypeStruct((n, out_c), jnp.bfloat16),
        grid=grid,
        in_specs=[
            pl.BlockSpec((tm, tk), lambda i, k: (i, k)),        # A (int8 counts)
            pl.BlockSpec((tk, c), lambda i, k: (k, 0)),         # x (K tile)
            pl.BlockSpec((tm, c), lambda i, k: (i, 0)),         # x (row tile)
            pl.BlockSpec((tm, 1), lambda i, k: (i, 0)),         # 1/deg
            pl.BlockSpec((c, out_c), lambda i, k: (0, 0)),      # W_r^T
            pl.BlockSpec((c, out_c), lambda i, k: (0, 0)),      # W_l^T
            pl.BlockSpec((1, out_c), lambda i, k: (0, 0)),      # bias
        ],
        out_specs=pl.BlockSpec((tm, out_c), lambda i, k: (i, 0)),
        scratch_shapes=[pltpu.VMEM((tm, c), jnp.float32)],
        compiler_params=pltpu.CompilerParams(
            dimension_semantics=("parallel", "arbitrary"),
            vmem_limit_bytes=_VMEM_LIMIT,
        ),
        cost_estimate=pl.CostEstimate(
            flops=int(flops), transcendentals=0, bytes_accessed=bytes_acc
        ),
    )(adj_i8, x_bf16, x_bf16, inv_deg, w_r_t, w_l_t, b)


def node_projection(x_bf16, w_node, *, tm):
    n, c = x_bf16.shape
    out_w = w_node.shape[1]
    tm = _pick_tile(n, tm, min_tiles=2)
    grid = (n // tm,)
    return pl.pallas_call(
        _node_proj_kernel,
        out_shape=jax.ShapeDtypeStruct((n, out_w), jnp.bfloat16),
        grid=grid,
        in_specs=[
            pl.BlockSpec((tm, c), lambda i: (i, 0)),
            pl.BlockSpec((c, out_w), lambda i: (0, 0)),
        ],
        out_specs=pl.BlockSpec((tm, out_w), lambda i: (i, 0)),
        compiler_params=pltpu.CompilerParams(
            dimension_semantics=("parallel",),
            vmem_limit_bytes=_VMEM_LIMIT,
        ),
        cost_estimate=pl.CostEstimate(
            flops=int(2 * n * c * out_w),
            transcendentals=0,
            bytes_accessed=int(n * c * 2 + c * out_w * 2 + n * out_w * 2),
        ),
    )(x_bf16, w_node)


def edge_fc_stack(y_src, y_dst, b0, hidden_layers, out_layer, *, te):
    ep, fc0 = y_src.shape
    out_c = out_layer[0].shape[1]
    te = _pick_tile(ep, te, min_tiles=2)
    grid = (ep // te,)

    args = [y_src, y_dst, b0]
    in_specs = [
        pl.BlockSpec((te, fc0), lambda i: (i, 0)),
        pl.BlockSpec((te, fc0), lambda i: (i, 0)),
        pl.BlockSpec((1, fc0), lambda i: (0, 0)),
    ]
    flops = 0
    prev = fc0
    for (w, b) in list(hidden_layers) + [out_layer]:
        args += [w, b]
        in_specs += [
            pl.BlockSpec(w.shape, lambda i: (0, 0)),
            pl.BlockSpec(b.shape, lambda i: (0, 0)),
        ]
        flops += 2 * ep * prev * w.shape[1]
        prev = w.shape[1]

    return pl.pallas_call(
        functools.partial(_edge_fc_kernel, num_hidden=len(hidden_layers)),
        out_shape=jax.ShapeDtypeStruct((ep, out_c), jnp.float32),
        grid=grid,
        in_specs=in_specs,
        out_specs=pl.BlockSpec((te, out_c), lambda i: (i, 0)),
        compiler_params=pltpu.CompilerParams(
            dimension_semantics=("parallel",),
            vmem_limit_bytes=_VMEM_LIMIT,
        ),
        cost_estimate=pl.CostEstimate(
            flops=int(flops),
            transcendentals=0,
            bytes_accessed=int(2 * ep * fc0 * 2 + ep * out_c * 4),
        ),
    )(*args)


# --------------------------------------------------------------------------
# Model
# --------------------------------------------------------------------------
def init_params(key, in_channels, out_channels, fc_channels, conv_channels):
    params = {"conv": [], "fc": []}
    in_c = in_channels
    for out_c in conv_channels:
        key, k1, k2, k3 = jax.random.split(key, 4)
        params["conv"].append(
            dict(
                w_r=0.1 * jax.random.normal(k1, (out_c, in_c), jnp.float32),
                w_l=0.1 * jax.random.normal(k2, (out_c, in_c), jnp.float32),
                b=0.1 * jax.random.normal(k3, (1, out_c), jnp.float32),
            )
        )
        in_c = out_c
    in_c = 2 * conv_channels[-1]  # prod_mode=False -> cat(x[src], x[dst])
    for out_c in fc_channels:
        key, k1, k2 = jax.random.split(key, 3)
        params["fc"].append(
            dict(
                w=0.1 * jax.random.normal(k1, (out_c, in_c), jnp.float32),
                b=0.1 * jax.random.normal(k2, (1, out_c), jnp.float32),
            )
        )
        in_c = out_c
    key, k1, k2 = jax.random.split(key, 3)
    params["fc_out"] = dict(
        w=0.1 * jax.random.normal(k1, (out_channels, in_c), jnp.float32),
        b=0.1 * jax.random.normal(k2, (1, out_channels), jnp.float32),
    )
    return params


def graphsage_forward(params, x, edge_index, *, tm=512, tk=4096, te=2048):
    assert len(params["fc"]) >= 1
    src, dst = edge_index
    n, in_c = x.shape
    e_cnt = src.shape[0]
    n_pad = _round_up(n, 128)
    e_pad = _round_up(e_cnt, 128)

    # Adjacency as int8 edge counts (exact for up to 127 parallel edges per
    # (dst, src) pair) and an O(E) fp32 degree - no fp32 N^2 intermediate.
    # TODO(synk): switch to a scalar-prefetched CSR gather-aggregation kernel
    # for large sparse graphs (dense A @ x wastes bandwidth at real sparsity).
    adj_i8 = jnp.zeros((n_pad, n_pad), jnp.int8).at[dst, src].add(1)
    deg = jnp.zeros((n_pad, 1), jnp.float32).at[dst].add(1.0)
    inv_deg = jnp.where(deg > 0.0, 1.0 / deg, 0.0)

    h = jnp.zeros((n_pad, in_c), jnp.bfloat16).at[:n].set(x.astype(jnp.bfloat16))

    # --- GraphSAGE conv stack (tiled Pallas kernels, bf16 in / bf16 out) ---
    for layer in params["conv"]:
        h = sage_layer(
            adj_i8, h, inv_deg,
            layer["w_r"].T.astype(jnp.bfloat16),
            layer["w_l"].T.astype(jnp.bfloat16),
            layer["b"].astype(jnp.float32),
            tm=tm, tk=tk,
        )

    # --- Edge readout fused with fc[0]:
    #     cat(h[src], h[dst]) @ W0^T == (h @ W0_src^T)[src] + (h @ W0_dst^T)[dst]
    cc = h.shape[1]
    w0 = params["fc"][0]["w"]                      # (fc0, 2*cc)
    b0 = params["fc"][0]["b"].astype(jnp.float32)  # (1, fc0)
    fc0 = w0.shape[0]
    w0_node = jnp.concatenate(
        [w0[:, :cc].T, w0[:, cc:].T], axis=1
    ).astype(jnp.bfloat16)                         # (cc, 2*fc0)
    y = node_projection(h, w0_node, tm=tm)         # (n_pad, 2*fc0) bf16

    # Pad the *indices* (not the gathered slabs) so the gather itself emits
    # the padded [E_pad, fc0] arrays; bias/act/cast happen inside the FC kernel.
    src_pad = jnp.zeros((e_pad,), jnp.int32).at[:e_cnt].set(src.astype(jnp.int32))
    dst_pad = jnp.zeros((e_pad,), jnp.int32).at[:e_cnt].set(dst.astype(jnp.int32))
    y_src = jnp.take(y[:, :fc0], src_pad, axis=0)  # (e_pad, fc0) bf16
    y_dst = jnp.take(y[:, fc0:], dst_pad, axis=0)  # (e_pad, fc0) bf16

    # --- Fused edge path: fc[0] epilogue + fc[1:] + fc_out in one call ---
    hidden = [
        (layer["w"].T.astype(jnp.bfloat16), layer["b"].astype(jnp.float32))
        for layer in params["fc"][1:]
    ]
    out_layer = (
        params["fc_out"]["w"].T.astype(jnp.bfloat16),
        params["fc_out"]["b"].astype(jnp.float32),
    )
    out = edge_fc_stack(y_src, y_dst, b0, hidden, out_layer, te=te)
    return out[:e_cnt]


# --------------------------------------------------------------------------
# Pure-JAX references
# --------------------------------------------------------------------------
def graphsage_forward_ref(params, x, edge_index):
    """Exact fp32 module semantics (prod_mode=False, rescon_mode=False)."""
    src, dst = edge_index
    n = x.shape[0]
    adj = jnp.zeros((n, n), jnp.float32).at[dst, src].add(1.0)
    deg = jnp.sum(adj, axis=1, keepdims=True)
    inv = jnp.where(deg > 0, 1.0 / deg, 0.0)
    h = x
    for layer in params["conv"]:
        agg = (adj @ h) * inv
        h = _act(h @ layer["w_r"].T + agg @ layer["w_l"].T + layer["b"])
    e = jnp.concatenate([h[src], h[dst]], axis=-1)
    for layer in params["fc"]:
        e = _act(e @ layer["w"].T + layer["b"])
    return e @ params["fc_out"]["w"].T + params["fc_out"]["b"]


def graphsage_forward_matched(params, x, edge_index):
    """Mirror of the kernel arithmetic (bf16 operands/storage, fp32 accum)."""
    def bdot(a, b):
        return jnp.dot(a.astype(jnp.bfloat16), b.astype(jnp.bfloat16),
                       preferred_element_type=jnp.float32)

    src, dst = edge_index
    n = x.shape[0]
    adj = jnp.zeros((n, n), jnp.float32).at[dst, src].add(1.0)
    deg = jnp.zeros((n, 1), jnp.float32).at[dst].add(1.0)
    inv = jnp.where(deg > 0, 1.0 / deg, 0.0)
    h = x.astype(jnp.bfloat16)
    for layer in params["conv"]:
        agg = bdot(adj, h) * inv
        t = bdot(h, layer["w_r"].T) + bdot(agg, layer["w_l"].T)
        h = _act(t + layer["b"]).astype(jnp.bfloat16)
    w0, b0 = params["fc"][0]["w"], params["fc"][0]["b"]
    cc = h.shape[1]
    y_src = bdot(h, w0[:, :cc].T).astype(jnp.bfloat16)
    y_dst = bdot(h, w0[:, cc:].T).astype(jnp.bfloat16)
    e = _act(y_src[src].astype(jnp.float32) + y_dst[dst].astype(jnp.float32) + b0)
    for layer in params["fc"][1:]:
        e = _act(bdot(e, layer["w"].T) + layer["b"])
    return bdot(e, params["fc_out"]["w"].T) + params["fc_out"]["b"]


# --------------------------------------------------------------------------
if __name__ == "__main__":
    N = 300           # nodes (padded to 384 inside the wrapper)
    E = 1000          # edges (padded to 1024 inside the wrapper)
    IN_CH = 16
    CONV_CHANNELS = [32, 32]
    FC_CHANNELS = [64, 32]
    OUT_CH = 8

    key = jax.random.PRNGKey(0)
    k_x, k_src, k_dst, k_params = jax.random.split(key, 4)

    x = jax.random.normal(k_x, (N, IN_CH), jnp.float32)
    src = jax.random.randint(k_src, (E,), 0, N, jnp.int32)
    dst = jax.random.randint(k_dst, (E,), 0, N, jnp.int32)
    edge_index = (src, dst)

    params = init_params(k_params, IN_CH, OUT_CH, FC_CHANNELS, CONV_CHANNELS)

    # Small tiles so all grids (3x3 SAGE, 3 node-proj, 4 edge-FC) are exercised
    # at these toy shapes; production defaults are the larger tm/tk/te above.
    fwd = jax.jit(functools.partial(graphsage_forward, tm=128, tk=128, te=256))
    out = jax.block_until_ready(fwd(params, x, edge_index))

    ref_matched = graphsage_forward_matched(params, x, edge_index)
    ref_f32 = graphsage_forward_ref(params, x, edge_index)

    assert out.shape == (E, OUT_CH), out.shape
    # Tight check vs a matched-precision (bf16 operands, fp32 accum) reference.
    assert jnp.allclose(out, ref_matched, atol=2e-3, rtol=2e-3), float(
        jnp.max(jnp.abs(out - ref_matched))
    )
    # Loose semantic sanity check vs the full-fp32 module reference.
    assert float(jnp.max(jnp.abs(out - ref_f32))) < 5e-2

    print("KERNEL_OK")
</pallas_src>

<mosaic_0001>
module attributes {stable_mosaic.version = 11 : i64} {
  func.func private @main(%arg0: i32) attributes {dimension_semantics = [#tpu.dimension_semantics<core_parallel>], iteration_bounds = array<i64: 2>, tpu.core_type = #tpu.core_type<sc_scalar_subcore>, window_params = []} {
    return
  }
}

module attributes {stable_mosaic.version = 11 : i64} {
  func.func private @main(%arg0: i32) attributes {dimension_semantics = [#tpu.dimension_semantics<core_parallel>], iteration_bounds = array<i64: 2>, tpu.core_type = #tpu.core_type<sc_scalar_subcore>, window_params = []} {
    return
  }
}

module attributes {stable_mosaic.version = 11 : i64} {
  func.func @_sage_kernel(%arg0: i32, %arg1: i32, %arg2: memref<128x128xi8, #tpu.memory_space<vmem>>, %arg3: memref<128x16xbf16, #tpu.memory_space<vmem>>, %arg4: memref<128x16xbf16, #tpu.memory_space<vmem>>, %arg5: memref<128x1xf32, #tpu.memory_space<vmem>>, %arg6: memref<16x32xbf16, #tpu.memory_space<vmem>>, %arg7: memref<16x32xbf16, #tpu.memory_space<vmem>>, %arg8: memref<1x32xf32, #tpu.memory_space<vmem>>, %arg9: memref<128x32xbf16, #tpu.memory_space<vmem>>, %arg10: memref<128x16xf32, #tpu.memory_space<vmem>>) attributes {dimension_semantics = [#tpu.dimension_semantics<parallel>, #tpu.dimension_semantics<arbitrary>], iteration_bounds = array<i64: 3, 3>, scalar_prefetch = 0 : i64, scratch_operands = 1 : i64, tpu.core_type = #tpu.core_type<tc>, window_params = [{transform_indices = @transform_0, window_bounds = array<i64: 128, 128>}, {transform_indices = @transform_1, window_bounds = array<i64: 128, 16>}, {transform_indices = @transform_2, window_bounds = array<i64: 128, 16>}, {transform_indices = @transform_3, window_bounds = array<i64: 128, 1>}, {pipeline_mode = #tpu.pipeline_mode<synchronous>, transform_indices = @transform_4, window_bounds = array<i64: 16, 32>}, {pipeline_mode = #tpu.pipeline_mode<synchronous>, transform_indices = @transform_5, window_bounds = array<i64: 16, 32>}, {pipeline_mode = #tpu.pipeline_mode<synchronous>, transform_indices = @transform_6, window_bounds = array<i64: 1, 32>}, {transform_indices = @transform_7, window_bounds = array<i64: 128, 32>}]} {
    %c0_i32 = arith.constant 0 : i32
    %0 = arith.cmpi eq, %arg1, %c0_i32 : i32
    %1 = arith.extui %0 : i1 to i32
    %c0_i32_0 = arith.constant 0 : i32
    %2 = arith.cmpi ne, %1, %c0_i32_0 : i32
    scf.if %2 {
      %cst_9 = arith.constant 0.000000e+00 : f32
      %13 = vector.broadcast %cst_9 : f32 to vector<128x16xf32>
      %c0_10 = arith.constant 0 : index
      %c0_11 = arith.constant 0 : index
      %14 = vector.load %arg10[%c0_10, %c0_11] : memref<128x16xf32, #tpu.memory_space<vmem>>, vector<128x16xf32>
      tpu.vector_store %arg10[%c0_10, %c0_11], %13 {strides = array<i32>} : memref<128x16xf32, #tpu.memory_space<vmem>>, vector<128x16xf32>,
    } else {
    }
    %c0 = arith.constant 0 : index
    %c0_1 = arith.constant 0 : index
    %3 = vector.load %arg2[%c0, %c0_1] : memref<128x128xi8, #tpu.memory_space<vmem>>, vector<128x128xi8>
    %4 = arith.sitofp %3 : vector<128x128xi8> to vector<128x128xbf16>
    %c0_2 = arith.constant 0 : index
    %c0_3 = arith.constant 0 : index
    %5 = vector.load %arg10[%c0_2, %c0_3] : memref<128x16xf32, #tpu.memory_space<vmem>>, vector<128x16xf32>
    %c0_4 = arith.constant 0 : index
    %c0_5 = arith.constant 0 : index
    %6 = vector.load %arg3[%c0_4, %c0_5] : memref<128x16xbf16, #tpu.memory_space<vmem>>, vector<128x16xbf16>
    %cst = arith.constant dense<0.000000e+00> : vector<128x16xf32>
    %7 = tpu.matmul %4, %6, %cst {dimension_numbers = #tpu.dot_dimension_numbers<[1], [0], [0], [1], [0, 0, 1, 1], [], []>} : vector<128x128xbf16>, vector<128x16xbf16>, vector<128x16xf32> -> vector<128x16xf32>
    %8 = arith.addf %5, %7 : vector<128x16xf32>
    %c0_6 = arith.constant 0 : index
    %c0_7 = arith.constant 0 : index
    %9 = vector.load %arg10[%c0_6, %c0_7] : memref<128x16xf32, #tpu.memory_space<vmem>>, vector<128x16xf32>
    tpu.vector_store %arg10[%c0_6, %c0_7], %8 {strides = array<i32>} : memref<128x16xf32, #tpu.memory_space<vmem>>, vector<128x16xf32>,
    %c2_i32 = arith.constant 2 : i32
    %10 = arith.cmpi eq, %arg1, %c2_i32 : i32
    %11 = arith.extui %10 : i1 to i32
    %c0_i32_8 = arith.constant 0 : i32
    %12 = arith.cmpi ne, %11, %c0_i32_8 : i32
    scf.if %12 {
      %c0_9 = arith.constant 0 : index
      %c0_10 = arith.constant 0 : index
      %13 = vector.load %arg10[%c0_9, %c0_10] : memref<128x16xf32, #tpu.memory_space<vmem>>, vector<128x16xf32>
      %c0_11 = arith.constant 0 : index
      %c0_12 = arith.constant 0 : index
      %14 = vector.load %arg5[%c0_11, %c0_12] : memref<128x1xf32, #tpu.memory_space<vmem>>, vector<128x1xf32>
      %15 = vector.broadcast %14 : vector<128x1xf32> to vector<128x16xf32>
      %16 = arith.mulf %13, %15 : vector<128x16xf32>
      %17 = arith.truncf %16 : vector<128x16xf32> to vector<128x16xbf16>
      %c0_13 = arith.constant 0 : index
      %c0_14 = arith.constant 0 : index
      %18 = vector.load %arg4[%c0_13, %c0_14] : memref<128x16xbf16, #tpu.memory_space<vmem>>, vector<128x16xbf16>
      %c0_15 = arith.constant 0 : index
      %c0_16 = arith.constant 0 : index
      %19 = vector.load %arg6[%c0_15, %c0_16] : memref<16x32xbf16, #tpu.memory_space<vmem>>, vector<16x32xbf16>
      %cst_17 = arith.constant dense<0.000000e+00> : vector<128x32xf32>
      %20 = tpu.matmul %18, %19, %cst_17 {dimension_numbers = #tpu.dot_dimension_numbers<[1], [0], [0], [1], [0, 0, 1, 1], [], []>} : vector<128x16xbf16>, vector<16x32xbf16>, vector<128x32xf32> -> vector<128x32xf32>
      %c0_18 = arith.constant 0 : index
      %c0_19 = arith.constant 0 : index
      %21 = vector.load %arg7[%c0_18, %c0_19] : memref<16x32xbf16, #tpu.memory_space<vmem>>, vector<16x32xbf16>
      %cst_20 = arith.constant dense<0.000000e+00> : vector<128x32xf32>
      %22 = tpu.matmul %17, %21, %cst_20 {dimension_numbers = #tpu.dot_dimension_numbers<[1], [0], [0], [1], [0, 0, 1, 1], [], []>} : vector<128x16xbf16>, vector<16x32xbf16>, vector<128x32xf32> -> vector<128x32xf32>
      %23 = arith.addf %20, %22 : vector<128x32xf32>
      %c0_21 = arith.constant 0 : index
      %c0_22 = arith.constant 0 : index
      %24 = vector.load %arg8[%c0_21, %c0_22] : memref<1x32xf32, #tpu.memory_space<vmem>>, vector<1x32xf32>
      %25 = vector.broadcast %24 : vector<1x32xf32> to vector<128x32xf32>
      %26 = arith.addf %23, %25 : vector<128x32xf32>
      %27 = arith.truncf %26 : vector<128x32xf32> to vector<128x32xbf16>
      %c0_23 = arith.constant 0 : index
      %c0_24 = arith.constant 0 : index
      %28 = vector.load %arg9[%c0_23, %c0_24] : memref<128x32xbf16, #tpu.memory_space<vmem>>, vector<128x32xbf16>
      tpu.vector_store %arg9[%c0_23, %c0_24], %27 {strides = array<i32>} : memref<128x32xbf16, #tpu.memory_space<vmem>>, vector<128x32xbf16>,
    } else {
    }
    return
  }
  func.func @transform_0(%arg0: i32, %arg1: i32) -> (i32, i32) {
    %c0_i32 = arith.constant 0 : i32
    return %arg0, %arg1 : i32, i32
  }
  func.func @transform_1(%arg0: i32, %arg1: i32) -> (i32, i32) {
    %c0_i32 = arith.constant 0 : i32
    %c0_i32_0 = arith.constant 0 : i32
    return %arg1, %c0_i32 : i32, i32
  }
  func.func @transform_2(%arg0: i32, %arg1: i32) -> (i32, i32) {
    %c0_i32 = arith.constant 0 : i32
    %c0_i32_0 = arith.constant 0 : i32
    return %arg0, %c0_i32 : i32, i32
  }
  func.func @transform_3(%arg0: i32, %arg1: i32) -> (i32, i32) {
    %c0_i32 = arith.constant 0 : i32
    %c0_i32_0 = arith.constant 0 : i32
    return %arg0, %c0_i32 : i32, i32
  }
  func.func @transform_4(%arg0: i32, %arg1: i32) -> (i32, i32) {
    %c0_i32 = arith.constant 0 : i32
    %c0_i32_0 = arith.constant 0 : i32
    %c0_i32_1 = arith.constant 0 : i32
    return %c0_i32, %c0_i32_0 : i32, i32
  }
  func.func @transform_5(%arg0: i32, %arg1: i32) -> (i32, i32) {
    %c0_i32 = arith.constant 0 : i32
    %c0_i32_0 = arith.constant 0 : i32
    %c0_i32_1 = arith.constant 0 : i32
    return %c0_i32, %c0_i32_0 : i32, i32
  }
  func.func @transform_6(%arg0: i32, %arg1: i32) -> (i32, i32) {
    %c0_i32 = arith.constant 0 : i32
    %c0_i32_0 = arith.constant 0 : i32
    %c0_i32_1 = arith.constant 0 : i32
    return %c0_i32, %c0_i32_0 : i32, i32
  }
  func.func @transform_7(%arg0: i32, %arg1: i32) -> (i32, i32) {
    %c0_i32 = arith.constant 0 : i32
    %c0_i32_0 = arith.constant 0 : i32
    return %arg0, %c0_i32 : i32, i32
  }
}

module attributes {stable_mosaic.version = 11 : i64} {
  func.func @_sage_kernel(%arg0: i32, %arg1: i32, %arg2: memref<128x128xi8, #tpu.memory_space<vmem>>, %arg3: memref<128x32xbf16, #tpu.memory_space<vmem>>, %arg4: memref<128x32xbf16, #tpu.memory_space<vmem>>, %arg5: memref<128x1xf32, #tpu.memory_space<vmem>>, %arg6: memref<32x32xbf16, #tpu.memory_space<vmem>>, %arg7: memref<32x32xbf16, #tpu.memory_space<vmem>>, %arg8: memref<1x32xf32, #tpu.memory_space<vmem>>, %arg9: memref<128x32xbf16, #tpu.memory_space<vmem>>, %arg10: memref<128x32xf32, #tpu.memory_space<vmem>>) attributes {dimension_semantics = [#tpu.dimension_semantics<parallel>, #tpu.dimension_semantics<arbitrary>], iteration_bounds = array<i64: 3, 3>, scalar_prefetch = 0 : i64, scratch_operands = 1 : i64, tpu.core_type = #tpu.core_type<tc>, window_params = [{transform_indices = @transform_0, window_bounds = array<i64: 128, 128>}, {transform_indices = @transform_1, window_bounds = array<i64: 128, 32>}, {transform_indices = @transform_2, window_bounds = array<i64: 128, 32>}, {transform_indices = @transform_3, window_bounds = array<i64: 128, 1>}, {pipeline_mode = #tpu.pipeline_mode<synchronous>, transform_indices = @transform_4, window_bounds = array<i64: 32, 32>}, {pipeline_mode = #tpu.pipeline_mode<synchronous>, transform_indices = @transform_5, window_bounds = array<i64: 32, 32>}, {pipeline_mode = #tpu.pipeline_mode<synchronous>, transform_indices = @transform_6, window_bounds = array<i64: 1, 32>}, {transform_indices = @transform_7, window_bounds = array<i64: 128, 32>}]} {
    %c0_i32 = arith.constant 0 : i32
    %0 = arith.cmpi eq, %arg1, %c0_i32 : i32
    %1 = arith.extui %0 : i1 to i32
    %c0_i32_0 = arith.constant 0 : i32
    %2 = arith.cmpi ne, %1, %c0_i32_0 : i32
    scf.if %2 {
      %cst_9 = arith.constant 0.000000e+00 : f32
      %13 = vector.broadcast %cst_9 : f32 to vector<128x32xf32>
      %c0_10 = arith.constant 0 : index
      %c0_11 = arith.constant 0 : index
      %14 = vector.load %arg10[%c0_10, %c0_11] : memref<128x32xf32, #tpu.memory_space<vmem>>, vector<128x32xf32>
      tpu.vector_store %arg10[%c0_10, %c0_11], %13 {strides = array<i32>} : memref<128x32xf32, #tpu.memory_space<vmem>>, vector<128x32xf32>,
    } else {
    }
    %c0 = arith.constant 0 : index
    %c0_1 = arith.constant 0 : index
    %3 = vector.load %arg2[%c0, %c0_1] : memref<128x128xi8, #tpu.memory_space<vmem>>, vector<128x128xi8>
    %4 = arith.sitofp %3 : vector<128x128xi8> to vector<128x128xbf16>
    %c0_2 = arith.constant 0 : index
    %c0_3 = arith.constant 0 : index
    %5 = vector.load %arg10[%c0_2, %c0_3] : memref<128x32xf32, #tpu.memory_space<vmem>>, vector<128x32xf32>
    %c0_4 = arith.constant 0 : index
    %c0_5 = arith.constant 0 : index
    %6 = vector.load %arg3[%c0_4, %c0_5] : memref<128x32xbf16, #tpu.memory_space<vmem>>, vector<128x32xbf16>
    %cst = arith.constant dense<0.000000e+00> : vector<128x32xf32>
    %7 = tpu.matmul %4, %6, %cst {dimension_numbers = #tpu.dot_dimension_numbers<[1], [0], [0], [1], [0, 0, 1, 1], [], []>} : vector<128x128xbf16>, vector<128x32xbf16>, vector<128x32xf32> -> vector<128x32xf32>
    %8 = arith.addf %5, %7 : vector<128x32xf32>
    %c0_6 = arith.constant 0 : index
    %c0_7 = arith.constant 0 : index
    %9 = vector.load %arg10[%c0_6, %c0_7] : memref<128x32xf32, #tpu.memory_space<vmem>>, vector<128x32xf32>
    tpu.vector_store %arg10[%c0_6, %c0_7], %8 {strides = array<i32>} : memref<128x32xf32, #tpu.memory_space<vmem>>, vector<128x32xf32>,
    %c2_i32 = arith.constant 2 : i32
    %10 = arith.cmpi eq, %arg1, %c2_i32 : i32
    %11 = arith.extui %10 : i1 to i32
    %c0_i32_8 = arith.constant 0 : i32
    %12 = arith.cmpi ne, %11, %c0_i32_8 : i32
    scf.if %12 {
      %c0_9 = arith.constant 0 : index
      %c0_10 = arith.constant 0 : index
      %13 = vector.load %arg10[%c0_9, %c0_10] : memref<128x32xf32, #tpu.memory_space<vmem>>, vector<128x32xf32>
      %c0_11 = arith.constant 0 : index
      %c0_12 = arith.constant 0 : index
      %14 = vector.load %arg5[%c0_11, %c0_12] : memref<128x1xf32, #tpu.memory_space<vmem>>, vector<128x1xf32>
      %15 = vector.broadcast %14 : vector<128x1xf32> to vector<128x32xf32>
      %16 = arith.mulf %13, %15 : vector<128x32xf32>
      %17 = arith.truncf %16 : vector<128x32xf32> to vector<128x32xbf16>
      %c0_13 = arith.constant 0 : index
      %c0_14 = arith.constant 0 : index
      %18 = vector.load %arg4[%c0_13, %c0_14] : memref<128x32xbf16, #tpu.memory_space<vmem>>, vector<128x32xbf16>
      %c0_15 = arith.constant 0 : index
      %c0_16 = arith.constant 0 : index
      %19 = vector.load %arg6[%c0_15, %c0_16] : memref<32x32xbf16, #tpu.memory_space<vmem>>, vector<32x32xbf16>
      %cst_17 = arith.constant dense<0.000000e+00> : vector<128x32xf32>
      %20 = tpu.matmul %18, %19, %cst_17 {dimension_numbers = #tpu.dot_dimension_numbers<[1], [0], [0], [1], [0, 0, 1, 1], [], []>} : vector<128x32xbf16>, vector<32x32xbf16>, vector<128x32xf32> -> vector<128x32xf32>
      %c0_18 = arith.constant 0 : index
      %c0_19 = arith.constant 0 : index
      %21 = vector.load %arg7[%c0_18, %c0_19] : memref<32x32xbf16, #tpu.memory_space<vmem>>, vector<32x32xbf16>
      %cst_20 = arith.constant dense<0.000000e+00> : vector<128x32xf32>
      %22 = tpu.matmul %17, %21, %cst_20 {dimension_numbers = #tpu.dot_dimension_numbers<[1], [0], [0], [1], [0, 0, 1, 1], [], []>} : vector<128x32xbf16>, vector<32x32xbf16>, vector<128x32xf32> -> vector<128x32xf32>
      %23 = arith.addf %20, %22 : vector<128x32xf32>
      %c0_21 = arith.constant 0 : index
      %c0_22 = arith.constant 0 : index
      %24 = vector.load %arg8[%c0_21, %c0_22] : memref<1x32xf32, #tpu.memory_space<vmem>>, vector<1x32xf32>
      %25 = vector.broadcast %24 : vector<1x32xf32> to vector<128x32xf32>
      %26 = arith.addf %23, %25 : vector<128x32xf32>
      %27 = arith.truncf %26 : vector<128x32xf32> to vector<128x32xbf16>
      %c0_23 = arith.constant 0 : index
      %c0_24 = arith.constant 0 : index
      %28 = vector.load %arg9[%c0_23, %c0_24] : memref<128x32xbf16, #tpu.memory_space<vmem>>, vector<128x32xbf16>
      tpu.vector_store %arg9[%c0_23, %c0_24], %27 {strides = array<i32>} : memref<128x32xbf16, #tpu.memory_space<vmem>>, vector<128x32xbf16>,
    } else {
    }
    return
  }
  func.func @transform_0(%arg0: i32, %arg1: i32) -> (i32, i32) {
    %c0_i32 = arith.constant 0 : i32
    return %arg0, %arg1 : i32, i32
  }
  func.func @transform_1(%arg0: i32, %arg1: i32) -> (i32, i32) {
    %c0_i32 = arith.constant 0 : i32
    %c0_i32_0 = arith.constant 0 : i32
    return %arg1, %c0_i32 : i32, i32
  }
  func.func @transform_2(%arg0: i32, %arg1: i32) -> (i32, i32) {
    %c0_i32 = arith.constant 0 : i32
    %c0_i32_0 = arith.constant 0 : i32
    return %arg0, %c0_i32 : i32, i32
  }
  func.func @transform_3(%arg0: i32, %arg1: i32) -> (i32, i32) {
    %c0_i32 = arith.constant 0 : i32
    %c0_i32_0 = arith.constant 0 : i32
    return %arg0, %c0_i32 : i32, i32
  }
  func.func @transform_4(%arg0: i32, %arg1: i32) -> (i32, i32) {
    %c0_i32 = arith.constant 0 : i32
    %c0_i32_0 = arith.constant 0 : i32
    %c0_i32_1 = arith.constant 0 : i32
    return %c0_i32, %c0_i32_0 : i32, i32
  }
  func.func @transform_5(%arg0: i32, %arg1: i32) -> (i32, i32) {
    %c0_i32 = arith.constant 0 : i32
    %c0_i32_0 = arith.constant 0 : i32
    %c0_i32_1 = arith.constant 0 : i32
    return %c0_i32, %c0_i32_0 : i32, i32
  }
  func.func @transform_6(%arg0: i32, %arg1: i32) -> (i32, i32) {
    %c0_i32 = arith.constant 0 : i32
    %c0_i32_0 = arith.constant 0 : i32
    %c0_i32_1 = arith.constant 0 : i32
    return %c0_i32, %c0_i32_0 : i32, i32
  }
  func.func @transform_7(%arg0: i32, %arg1: i32) -> (i32, i32) {
    %c0_i32 = arith.constant 0 : i32
    %c0_i32_0 = arith.constant 0 : i32
    return %arg0, %c0_i32 : i32, i32
  }
}

module attributes {stable_mosaic.version = 11 : i64} {
  func.func @_node_proj_kernel(%arg0: i32, %arg1: memref<128x32xbf16, #tpu.memory_space<vmem>>, %arg2: memref<32x128xbf16, #tpu.memory_space<vmem>>, %arg3: memref<128x128xbf16, #tpu.memory_space<vmem>>) attributes {dimension_semantics = [#tpu.dimension_semantics<parallel>], iteration_bounds = array<i64: 3>, scalar_prefetch = 0 : i64, scratch_operands = 0 : i64, tpu.core_type = #tpu.core_type<tc>, window_params = [{transform_indices = @transform_0, window_bounds = array<i64: 128, 32>}, {pipeline_mode = #tpu.pipeline_mode<synchronous>, transform_indices = @transform_1, window_bounds = array<i64: 32, 128>}, {transform_indices = @transform_2, window_bounds = array<i64: 128, 128>}]} {
    %c0 = arith.constant 0 : index
    %c0_0 = arith.constant 0 : index
    %0 = vector.load %arg1[%c0, %c0_0] : memref<128x32xbf16, #tpu.memory_space<vmem>>, vector<128x32xbf16>
    %c0_1 = arith.constant 0 : index
    %c0_2 = arith.constant 0 : index
    %1 = vector.load %arg2[%c0_1, %c0_2] : memref<32x128xbf16, #tpu.memory_space<vmem>>, vector<32x128xbf16>
    %cst = arith.constant dense<0.000000e+00> : vector<128x128xf32>
    %2 = tpu.matmul %0, %1, %cst {dimension_numbers = #tpu.dot_dimension_numbers<[1], [0], [0], [1], [0, 0, 1, 1], [], []>} : vector<128x32xbf16>, vector<32x128xbf16>, vector<128x128xf32> -> vector<128x128xf32>
    %3 = arith.truncf %2 : vector<128x128xf32> to vector<128x128xbf16>
    %c0_3 = arith.constant 0 : index
    %c0_4 = arith.constant 0 : index
    %4 = vector.load %arg3[%c0_3, %c0_4] : memref<128x128xbf16, #tpu.memory_space<vmem>>, vector<128x128xbf16>
    tpu.vector_store %arg3[%c0_3, %c0_4], %3 {strides = array<i32>} : memref<128x128xbf16, #tpu.memory_space<vmem>>, vector<128x128xbf16>,
    return
  }
  func.func @transform_0(%arg0: i32) -> (i32, i32) {
    %c0_i32 = arith.constant 0 : i32
    %c0_i32_0 = arith.constant 0 : i32
    return %arg0, %c0_i32 : i32, i32
  }
  func.func @transform_1(%arg0: i32) -> (i32, i32) {
    %c0_i32 = arith.constant 0 : i32
    %c0_i32_0 = arith.constant 0 : i32
    %c0_i32_1 = arith.constant 0 : i32
    return %c0_i32, %c0_i32_0 : i32, i32
  }
  func.func @transform_2(%arg0: i32) -> (i32, i32) {
    %c0_i32 = arith.constant 0 : i32
    %c0_i32_0 = arith.constant 0 : i32
    return %arg0, %c0_i32 : i32, i32
  }
}

module attributes {stable_mosaic.version = 11 : i64} {
  func.func @_edge_fc_kernel(%arg0: i32, %arg1: memref<256x64xbf16, #tpu.memory_space<vmem>>, %arg2: memref<256x64xbf16, #tpu.memory_space<vmem>>, %arg3: memref<1x64xf32, #tpu.memory_space<vmem>>, %arg4: memref<64x32xbf16, #tpu.memory_space<vmem>>, %arg5: memref<1x32xf32, #tpu.memory_space<vmem>>, %arg6: memref<32x8xbf16, #tpu.memory_space<vmem>>, %arg7: memref<1x8xf32, #tpu.memory_space<vmem>>, %arg8: memref<256x8xf32, #tpu.memory_space<vmem>>) attributes {dimension_semantics = [#tpu.dimension_semantics<parallel>], iteration_bounds = array<i64: 4>, scalar_prefetch = 0 : i64, scratch_operands = 0 : i64, tpu.core_type = #tpu.core_type<tc>, window_params = [{transform_indices = @transform_0, window_bounds = array<i64: 256, 64>}, {transform_indices = @transform_1, window_bounds = array<i64: 256, 64>}, {pipeline_mode = #tpu.pipeline_mode<synchronous>, transform_indices = @transform_2, window_bounds = array<i64: 1, 64>}, {pipeline_mode = #tpu.pipeline_mode<synchronous>, transform_indices = @transform_3, window_bounds = array<i64: 64, 32>}, {pipeline_mode = #tpu.pipeline_mode<synchronous>, transform_indices = @transform_4, window_bounds = array<i64: 1, 32>}, {pipeline_mode = #tpu.pipeline_mode<synchronous>, transform_indices = @transform_5, window_bounds = array<i64: 32, 8>}, {pipeline_mode = #tpu.pipeline_mode<synchronous>, transform_indices = @transform_6, window_bounds = array<i64: 1, 8>}, {transform_indices = @transform_7, window_bounds = array<i64: 256, 8>}]} {
    %c0 = arith.constant 0 : index
    %c0_0 = arith.constant 0 : index
    %0 = vector.load %arg1[%c0, %c0_0] : memref<256x64xbf16, #tpu.memory_space<vmem>>, vector<256x64xbf16>
    %1 = arith.extf %0 : vector<256x64xbf16> to vector<256x64xf32>
    %c0_1 = arith.constant 0 : index
    %c0_2 = arith.constant 0 : index
    %2 = vector.load %arg2[%c0_1, %c0_2] : memref<256x64xbf16, #tpu.memory_space<vmem>>, vector<256x64xbf16>
    %3 = arith.extf %2 : vector<256x64xbf16> to vector<256x64xf32>
    %4 = arith.addf %1, %3 : vector<256x64xf32>
    %c0_3 = arith.constant 0 : index
    %c0_4 = arith.constant 0 : index
    %5 = vector.load %arg3[%c0_3, %c0_4] : memref<1x64xf32, #tpu.memory_space<vmem>>, vector<1x64xf32>
    %6 = vector.broadcast %5 : vector<1x64xf32> to vector<256x64xf32>
    %7 = arith.addf %4, %6 : vector<256x64xf32>
    %c0_5 = arith.constant 0 : index
    %c0_6 = arith.constant 0 : index
    %8 = vector.load %arg4[%c0_5, %c0_6] : memref<64x32xbf16, #tpu.memory_space<vmem>>, vector<64x32xbf16>
    %c0_7 = arith.constant 0 : index
    %c0_8 = arith.constant 0 : index
    %9 = vector.load %arg5[%c0_7, %c0_8] : memref<1x32xf32, #tpu.memory_space<vmem>>, vector<1x32xf32>
    %10 = arith.truncf %7 : vector<256x64xf32> to vector<256x64xbf16>
    %cst = arith.constant dense<0.000000e+00> : vector<256x32xf32>
    %11 = tpu.matmul %10, %8, %cst {dimension_numbers = #tpu.dot_dimension_numbers<[1], [0], [0], [1], [0, 0, 1, 1], [], []>} : vector<256x64xbf16>, vector<64x32xbf16>, vector<256x32xf32> -> vector<256x32xf32>
    %12 = vector.broadcast %9 : vector<1x32xf32> to vector<256x32xf32>
    %13 = arith.addf %11, %12 : vector<256x32xf32>
    %c0_9 = arith.constant 0 : index
    %c0_10 = arith.constant 0 : index
    %14 = vector.load %arg6[%c0_9, %c0_10] : memref<32x8xbf16, #tpu.memory_space<vmem>>, vector<32x8xbf16>
    %c0_11 = arith.constant 0 : index
    %c0_12 = arith.constant 0 : index
    %15 = vector.load %arg7[%c0_11, %c0_12] : memref<1x8xf32, #tpu.memory_space<vmem>>, vector<1x8xf32>
    %16 = arith.truncf %13 : vector<256x32xf32> to vector<256x32xbf16>
    %cst_13 = arith.constant dense<0.000000e+00> : vector<256x8xf32>
    %17 = tpu.matmul %16, %14, %cst_13 {dimension_numbers = #tpu.dot_dimension_numbers<[1], [0], [0], [1], [0, 0, 1, 1], [], []>} : vector<256x32xbf16>, vector<32x8xbf16>, vector<256x8xf32> -> vector<256x8xf32>
    %18 = vector.broadcast %15 : vector<1x8xf32> to vector<256x8xf32>
    %19 = arith.addf %17, %18 : vector<256x8xf32>
    %c0_14 = arith.constant 0 : index
    %c0_15 = arith.constant 0 : index
    %20 = vector.load %arg8[%c0_14, %c0_15] : memref<256x8xf32, #tpu.memory_space<vmem>>, vector<256x8xf32>
    tpu.vector_store %arg8[%c0_14, %c0_15], %19 {strides = array<i32>} : memref<256x8xf32, #tpu.memory_space<vmem>>, vector<256x8xf32>,
    return
  }
  func.func @transform_0(%arg0: i32) -> (i32, i32) {
    %c0_i32 = arith.constant 0 : i32
    %c0_i32_0 = arith.constant 0 : i32
    return %arg0, %c0_i32 : i32, i32
  }
  func.func @transform_1(%arg0: i32) -> (i32, i32) {
    %c0_i32 = arith.constant 0 : i32
    %c0_i32_0 = arith.constant 0 : i32
    return %arg0, %c0_i32 : i32, i32
  }
  func.func @transform_2(%arg0: i32) -> (i32, i32) {
    %c0_i32 = arith.constant 0 : i32
    %c0_i32_0 = arith.constant 0 : i32
    %c0_i32_1 = arith.constant 0 : i32
    return %c0_i32, %c0_i32_0 : i32, i32
  }
  func.func @transform_3(%arg0: i32) -> (i32, i32) {
    %c0_i32 = arith.constant 0 : i32
    %c0_i32_0 = arith.constant 0 : i32
    %c0_i32_1 = arith.constant 0 : i32
    return %c0_i32, %c0_i32_0 : i32, i32
  }
  func.func @transform_4(%arg0: i32) -> (i32, i32) {
    %c0_i32 = arith.constant 0 : i32
    %c0_i32_0 = arith.constant 0 : i32
    %c0_i32_1 = arith.constant 0 : i32
    return %c0_i32, %c0_i32_0 : i32, i32
  }
  func.func @transform_5(%arg0: i32) -> (i32, i32) {
    %c0_i32 = arith.constant 0 : i32
    %c0_i32_0 = arith.constant 0 : i32
    %c0_i32_1 = arith.constant 0 : i32
    return %c0_i32, %c0_i32_0 : i32, i32
  }
  func.func @transform_6(%arg0: i32) -> (i32, i32) {
    %c0_i32 = arith.constant 0 : i32
    %c0_i32_0 = arith.constant 0 : i32
    %c0_i32_1 = arith.constant 0 : i32
    return %c0_i32, %c0_i32_0 : i32, i32
  }
  func.func @transform_7(%arg0: i32) -> (i32, i32) {
    %c0_i32 = arith.constant 0 : i32
    %c0_i32_0 = arith.constant 0 : i32
    return %arg0, %c0_i32 : i32, i32
  }
}

</mosaic_0001>

<bundles_post_ra>
// kernel: graphsage_forward.4
= control target key start
LH: loop header
LB: loop body
LE: loop exit
PB: predicated region body
PF: predicated region fallthrough
CT: control target
= control target key end

     0   :  { %s2124_s0 = inlined_call_operand.vmem [shape: s8[384,384], index: 0, kind: input, shape index: {}]   ;;  %s2125_s1 = inlined_call_operand.vmem [shape: bf16[384,16], index: 1, kind: input, shape index: {}, may-alias: {1,2}]   ;;  %s2126_s2 = inlined_call_operand.vmem [shape: bf16[384,16], index: 2, kind: input, shape index: {}, may-alias: {1,2}]   ;;  %s2127_s3 = inlined_call_operand.vmem [shape: f32[384,1], index: 3, kind: input, shape index: {}]   ;;  %s2128_s4 = inlined_call_operand.vmem [shape: bf16[16,32], index: 4, kind: input, shape index: {}]   ;;  %s2129_s5 = inlined_call_operand.vmem [shape: bf16[16,32], index: 5, kind: input, shape index: {}]   ;;  %s2130_s6 = inlined_call_operand.vmem [shape: f32[1,32], index: 6, kind: input, shape index: {}]   ;;  %s2131_s7 = inlined_call_operand.vmem [shape: bf16[384,32], index: 7, kind: output, shape index: {}]  }
   0x1   :  { %2133 = sst [smem:[#allocation5_spill]] %s2124_s0 }
   0x2   :  { %s1841_s24 = smov 0   ;;  %s1843_s25 = smov 0  }
   0x3   :  { %s1845_s26 = smov 0   ;;  %s1847_s27 = smov 0  }
   0x4   :  { %s1849_s28 = smov 0   ;;  %s1851_s29 = smov 0  }
   0x5   :  { %s1853_s30 = smov 0  }
   0x6 LB: > { %s26_s8 = sadd.s32 1, %s1789_s28  ;;  %s29_s9 = sadd.s32 1, %s1793_s29  ;;  %s1797_s30 = sphi %s1853_s30, %s17_s30   ;;  %s1793_s29 = sphi %s1851_s29, %s2142_s29   ;;  %s1789_s28 = sphi %s1849_s28, %s2141_s28   ;;  %s1785_s27 = sphi %s1847_s27, %s2140_s27   ;;  %s1781_s26 = sphi %s1845_s26, %s2139_s26   ;;  %s1777_s25 = sphi %s1843_s25, %s2138_s25   ;;  %s1773_s24 = sphi %s1841_s24, %s2137_s24  }
   0x7   : > { %p27_p0 = scmp.ge.s32.totalorder %s26_s8, 3  ;;  %p45_p1 = scmp.ne.s32.totalorder %s1777_s25, %s1773_s24 }
   0x8   : > { %p46_p2 = scmp.eq.s32.totalorder %s1797_s30, 0  ;;  %s38_s13 = sadd.s32 1, %s1777_s25 }
   0x9   : > { %s2144_s8 = smov (%p27_p0, %s26_s8), 0  ;;  %s2146_s9 = smov (!%p27_p0, %s29_s9), %s1793_s29 }
   0xa   : > { %p47_p3 = por %p46_p2, %p45_p1  ;;  %p31_p4 = scmp.ge.s32.totalorder %s2146_s9, 3 }
   0xb   : > { %s34_s10 = ssub.s32 %s1789_s28, %s2144_s8  ;;  %p1452_p6 = scmp.ge.s32.totalorder %s1797_s30, 9 }
   0xc   : > { %s2148_s9 = smov (%p31_p4, %s2146_s9), 0 }
   0xd   : > { %2134 = sst [smem:[#allocation4_spill]] %s2148_s9  ;;  %s33_s11 = ssub.s32 %s1793_s29, %s2148_s9 }
   0xe   : > { %s35_s12 = sor.u32 %s34_s10, %s33_s11  ;;  %247 = sbr.rel (%p1452_p6) target bundleno = 39 (0x27), region = 28 }
   0xf   : > { %p36_p5 = scmp.eq.s32.totalorder %s35_s12, 0 }
  0x11   : > { %s1892_s14 = scalar_select %p36_p5, %s1777_s25, %s38_s13  }
  0x13   : > { %250 = sbr.rel (!%p47_p3) target bundleno = 39 (0x27), region = 32  ;;  %s252_s15 = sand.u32 (%p47_p3), 1, %s1777_s25  }
  0x14   : > { %s1664_s16 = smul.u32 (%p47_p3), 48, %s1793_s29  ;;  %s1453_s17 = sshll.u32 (%p47_p3), %s252_s15, 5 }
  0x15   : > { %s2135_s0 = sld [smem:[#allocation5_spill]] (%p47_p3)  ;;  %s254_s23 = scalar_lea.vmem (%p47_p3), [#allocation3], %s1453_s17 }
  0x16   : > { %s257_s18 = sadd.s32 (%p47_p3), %s1789_s28, %s1664_s16 }
  0x17   : > { %s1456_s19 = sshll.u32 (%p47_p3), %s257_s18, 1 }
  0x1b   : > { %s1901_s22 = scalar_lea.vmem %s2135_s0, %s1456_s19 }
  0x1c   : > { %v276_v0 = vld [vmem:[%s1901_s22] sm:$0x3]  ;;  %v278_v1 = vld [vmem:[%s1901_s22 + $0x6] sm:$0x3]  ;;  %v280_v2 = vld [vmem:[%s1901_s22 + $0xc] sm:$0x3] }
  0x1d   : > { %277 = vst [vmem:[%s254_s23] sm:$0x3] %v276_v0  ;;  %279 = vst [vmem:[%s254_s23 + $0x2] sm:$0x3] %v278_v1  ;;  %v282_v3 = vld [vmem:[%s1901_s22 + $0x12] sm:$0x3] }
  0x1e   : > { %281 = vst [vmem:[%s254_s23 + $0x4] sm:$0x3] %v280_v2  ;;  %v284_v4 = vld [vmem:[%s1901_s22 + $0x18] sm:$0x3]  ;;  %v286_v5 = vld [vmem:[%s1901_s22 + $0x1e] sm:$0x3] }
  0x1f   : > { %283 = vst [vmem:[%s254_s23 + $0x6] sm:$0x3] %v282_v3  ;;  %285 = vst [vmem:[%s254_s23 + $0x8] sm:$0x3] %v284_v4  ;;  %v288_v6 = vld [vmem:[%s1901_s22 + $0x24] sm:$0x3] }
  0x20   : > { %287 = vst [vmem:[%s254_s23 + $0xa] sm:$0x3] %v286_v5  ;;  %v290_v7 = vld [vmem:[%s1901_s22 + $0x2a] sm:$0x3]  ;;  %v292_v8 = vld [vmem:[%s1901_s22 + $0x30] sm:$0x3] }
  0x21   : > { %289 = vst [vmem:[%s254_s23 + $0xc] sm:$0x3] %v288_v6  ;;  %291 = vst [vmem:[%s254_s23 + $0xe] sm:$0x3] %v290_v7  ;;  %v294_v9 = vld [vmem:[%s1901_s22 + $0x36] sm:$0x3] }
  0x22   : > { %293 = vst [vmem:[%s254_s23 + $0x10] sm:$0x3] %v292_v8  ;;  %v296_v10 = vld [vmem:[%s1901_s22 + $0x3c] sm:$0x3]  ;;  %v298_v11 = vld [vmem:[%s1901_s22 + $0x42] sm:$0x3] }
  0x23   : > { %295 = vst [vmem:[%s254_s23 + $0x12] sm:$0x3] %v294_v9  ;;  %297 = vst [vmem:[%s254_s23 + $0x14] sm:$0x3] %v296_v10  ;;  %v300_v12 = vld [vmem:[%s1901_s22 + $0x48] sm:$0x3] }
  0x24   : > { %299 = vst [vmem:[%s254_s23 + $0x16] sm:$0x3] %v298_v11  ;;  %v302_v13 = vld [vmem:[%s1901_s22 + $0x4e] sm:$0x3]  ;;  %v304_v14 = vld [vmem:[%s1901_s22 + $0x54] sm:$0x3] }
  0x25   : > { %301 = vst [vmem:[%s254_s23 + $0x18] sm:$0x3] %v300_v12  ;;  %303 = vst [vmem:[%s254_s23 + $0x1a] sm:$0x3] %v302_v13  ;;  %v306_v15 = vld [vmem:[%s1901_s22 + $0x5a] sm:$0x3] }
  0x26   : > { %305 = vst [vmem:[%s254_s23 + $0x1c] sm:$0x3] %v304_v14  ;;  %307 = vst [vmem:[%s254_s23 + $0x1e] sm:$0x3] %v306_v15 }
  0x27 PF: > { %p1457_p7 = scmp.ge.s32.totalorder %s1797_s30, 1  ;;  %p389_p8 = scmp.lt.s32.totalorder %s1797_s30, 10 }
  0x29   : > { %p390_p9 = pnand %p1457_p7, %p389_p8 }
  0x2a   : > { %s396_s10 = sand.u32 (!%p390_p9), 1, %s1773_s24   ;;  %s1459_s11 = sshll.u32 (!%p390_p9), %s1781_s26, 4 }
  0x2b   : > { %393 = sbr.rel (%p390_p9) target bundleno = 675 (0x2a3), region = 85  ;;  %s1458_s12 = sshll.u32 (!%p390_p9), %s396_s10, 5 }
  0x2c   : > { %p444_p10 = scmp.lt.s32.totalorder (!%p390_p9), %s1459_s11, 47  ;;  %s1461_s13 = sshll.u32 (!%p390_p9), %s1785_s27, 4 }
  0x2d   : > { %p450_p11 = scmp.lt.s32.totalorder (!%p390_p9), %s1461_s13, 47  ;;  %p1467_p12 = scmp.ne.s32.totalorder (!%p390_p9), %s1781_s26, 0 }
  0x30   : > { %s2150_s11 = smov (!%p444_p10, %s1459_s11), 47  ;;  %s2152_s13 = smov (!%p450_p11, %s1461_s13), 47 }
  0x31   : > { %s1460_s15 = sshll.u32 %s2150_s11, 2  ;;  %s1462_s19 = sshll.u32 %s2152_s13, 2 }
  0x32   : > { %s1927_s18 = scalar_lea.vmem %s2125_s1, %s1460_s15  ;;  %s1464_s20 = sshll.u32 %s2152_s13, 3 }
  0x33   : > { %s1932_s23 = scalar_lea.vmem %s2126_s2, %s1462_s19  ;;  %s1937_s27 = scalar_lea.vmem %s2127_s3, %s1464_s20 }
  0x34   : > { %s1942_s9 = scalar_lea.vmem %s2131_s7, %s1462_s19  ;;  %s1944_s15 = scalar_lea.vmem [#allocation3], %s1458_s12 }
  0x35   : > { %471 = sbr.rel (%p1467_p12) target bundleno = 67 (0x43), region = 93 }
  0x3a   : > { %vm472_vm0 = vcmask 130048   ;;  %v1799_v16 = vmov 0.0  }
  0x3b   : > { %473 = vst.msk [vmem:[#allocation2] sm:$0xff] %vm472_vm0, %v1799_v16  ;;  %474 = vst.msk [vmem:[#allocation2 + $0x8] sm:$0xff] %vm472_vm0, %v1799_v16 }
  0x3c   : > { %475 = vst.msk [vmem:[#allocation2 + $0x10] sm:$0xff] %vm472_vm0, %v1799_v16  ;;  %476 = vst.msk [vmem:[#allocation2 + $0x18] sm:$0xff] %vm472_vm0, %v1799_v16 }
  0x3d   : > { %477 = vst.msk [vmem:[#allocation2 + $0x20] sm:$0xff] %vm472_vm0, %v1799_v16  ;;  %478 = vst.msk [vmem:[#allocation2 + $0x28] sm:$0xff] %vm472_vm0, %v1799_v16 }
  0x3e   : > { %479 = vst.msk [vmem:[#allocation2 + $0x30] sm:$0xff] %vm472_vm0, %v1799_v16  ;;  %480 = vst.msk [vmem:[#allocation2 + $0x38] sm:$0xff] %vm472_vm0, %v1799_v16 }
  0x3f   : > { %481 = vst.msk [vmem:[#allocation2 + $0x40] sm:$0xff] %vm472_vm0, %v1799_v16  ;;  %482 = vst.msk [vmem:[#allocation2 + $0x48] sm:$0xff] %vm472_vm0, %v1799_v16 }
  0x40   : > { %483 = vst.msk [vmem:[#allocation2 + $0x50] sm:$0xff] %vm472_vm0, %v1799_v16  ;;  %484 = vst.msk [vmem:[#allocation2 + $0x58] sm:$0xff] %vm472_vm0, %v1799_v16 }
  0x41   : > { %485 = vst.msk [vmem:[#allocation2 + $0x60] sm:$0xff] %vm472_vm0, %v1799_v16  ;;  %486 = vst.msk [vmem:[#allocation2 + $0x68] sm:$0xff] %vm472_vm0, %v1799_v16 }
  0x42   : > { %487 = vst.msk [vmem:[#allocation2 + $0x70] sm:$0xff] %vm472_vm0, %v1799_v16  ;;  %488 = vst.msk [vmem:[#allocation2 + $0x78] sm:$0xff] %vm472_vm0, %v1799_v16 }
  0x43 PF: > { %v1723_v17 = vld [vmem:[%s1927_s18 + $0x38] sm:$0xff]   ;;  %v1724_v18 = vld [vmem:[%s1927_s18 + $0x30] sm:$0xff]   ;;  %v1725_v19 = vld [vmem:[%s1927_s18 + $0x28] sm:$0xff]   ;;  %vm762_vm1 = vcmask 130048   ;;  %p1484_p13 = scmp.ne.s32.totalorder %s1781_s26, 2 }
  0x44   : > { %1580 = vmatprep.subr.bf16.mxu0 %v1723_v17  ;;  %1648 = vmatprep.subr.bf16.mxu1 %v1723_v17  ;;  %v1726_v20 = vld [vmem:[%s1927_s18 + $0x20] sm:$0xff]   ;;  %v497_v23 = vld [vmem:[%s1944_s15 + $0x10] sm:$0x3]  ;;  %v498_v26 = vld [vmem:[%s1944_s15 + $0x12] sm:$0x3] }
  0x45   : > { %1581 = vmatpush3.bf16.msra.mxu0 %v1723_v17  ;;  %1656 = vmatpush3.bf16.msra.mxu1 %v1723_v17  ;;  %v489_v21 = vld [vmem:[%s1944_s15] sm:$0x3]  ;;  %v490_v22 = vld [vmem:[%s1944_s15 + $0x2] sm:$0x3]  ;;  %v513_v27 = vunpack.c.l.s8.bf16 %v497_v23  ;;  %v514_v28 = vunpack.c.l.s8.bf16 %v498_v26  ;;  %v1727_v30 = vld [vmem:[%s1927_s18 + $0x18] sm:$0xff]  }
  0x46   : > { %1582 = vmatprep.subr.bf16.mxu0 %v1724_v18  ;;  %1649 = vmatprep.subr.bf16.mxu1 %v1724_v18  ;;  %v505_v24 = vunpack.c.l.s8.bf16 %v489_v21  ;;  %v506_v25 = vunpack.c.l.s8.bf16 %v490_v22  ;;  %v1728_v32 = vld [vmem:[%s1927_s18 + $0x10] sm:$0xff]   ;;  %v1729_v33 = vld [vmem:[%s1927_s18 + $0x8] sm:$0xff]   ;;  %v1730_v34 = vld [vmem:[%s1927_s18] sm:$0xff]  }
  0x47   : > { %v1472_v31 = vcombine.low %v513_v27, %v514_v28  ;;  %v491_v35 = vld [vmem:[%s1944_s15 + $0x4] sm:$0x3]  ;;  %v492_v36 = vld [vmem:[%s1944_s15 + $0x6] sm:$0x3]  ;;  %v499_v37 = vld [vmem:[%s1944_s15 + $0x14] sm:$0x3] }
  0x48   : > { %v1468_v29 = vcombine.low %v505_v24, %v506_v25  ;;  %v500_v38 = vld [vmem:[%s1944_s15 + $0x16] sm:$0x3]  ;;  %v493_v39 = vld [vmem:[%s1944_s15 + $0x8] sm:$0x3]  ;;  %v494_v40 = vld [vmem:[%s1944_s15 + $0xa] sm:$0x3]  ;;  %v507_v43 = vunpack.c.l.s8.bf16 %v491_v35  ;;  %v508_v44 = vunpack.c.l.s8.bf16 %v492_v36  ;;  %v515_v45 = vunpack.c.l.s8.bf16 %v499_v37 }
  0x49   : > { %1583 = vmatpush3.bf16.msra.mxu0 %v1724_v18  ;;  %1657 = vmatpush3.bf16.msra.mxu1 %v1724_v18  ;;  %v501_v41 = vld [vmem:[%s1944_s15 + $0x18] sm:$0x3]  ;;  %v502_v42 = vld [vmem:[%s1944_s15 + $0x1a] sm:$0x3]  ;;  %v516_v46 = vunpack.c.l.s8.bf16 %v500_v38  ;;  %v509_v47 = vunpack.c.l.s8.bf16 %v493_v39  ;;  %v510_v48 = vunpack.c.l.s8.bf16 %v494_v40  ;;  %v495_v53 = vld [vmem:[%s1944_s15 + $0xc] sm:$0x3] }
  0x4a   : > { %1584 = vmatprep.subr.bf16.mxu0 %v1725_v19  ;;  %1650 = vmatprep.subr.bf16.mxu1 %v1725_v19  ;;  %v517_v49 = vunpack.c.l.s8.bf16 %v501_v41  ;;  %v518_v50 = vunpack.c.l.s8.bf16 %v502_v42  ;;  %v1469_v51 = vcombine.low %v507_v43, %v508_v44  ;;  %v496_v56 = vld [vmem:[%s1944_s15 + $0xe] sm:$0x3]  ;;  %v503_v57 = vld [vmem:[%s1944_s15 + $0x1c] sm:$0x3]  ;;  %v504_v58 = vld [vmem:[%s1944_s15 + $0x1e] sm:$0x3]  ;;  %v511_v59 = vunpack.c.l.s8.bf16 %v495_v53 }
  0x4b   : > { %1596 = vmatprep.mubr.bf16.mxu0 %v1468_v29  ;;  %1604 = vmatprep.mubr.bf16.mxu1 %v1472_v31  ;;  %v1473_v52 = vcombine.low %v515_v45, %v516_v46  ;;  %v1470_v54 = vcombine.low %v509_v47, %v510_v48  ;;  %v512_v60 = vunpack.c.l.s8.bf16 %v496_v56  ;;  %v519_v61 = vunpack.c.l.s8.bf16 %v503_v57  ;;  %v523_v1 = vld [vmem:[#allocation2 + $0x10] sm:$0xff]  ;;  %v521_v5 = vld [vmem:[#allocation2] sm:$0xff]  ;;  %v524_v11 = vld [vmem:[#allocation2 + $0x18] sm:$0xff] }
  0x4c   : > { %v1474_v55 = vcombine.low %v517_v49, %v518_v50  ;;  %v520_v62 = vunpack.c.l.s8.bf16 %v504_v58  ;;  %v531_v2 = vld [vmem:[#allocation2 + $0x50] sm:$0xff]  ;;  %v529_v6 = vld [vmem:[#allocation2 + $0x40] sm:$0xff]  ;;  %v532_v12 = vld [vmem:[#allocation2 + $0x58] sm:$0xff] }
  0x4d   : > { %1585 = vmatpush3.bf16.msra.mxu0 %v1725_v19  ;;  %1658 = vmatpush3.bf16.msra.mxu1 %v1725_v19  ;;  %v1471_v63 = vcombine.low %v511_v59, %v512_v60  ;;  %v522_v17 = vld [vmem:[#allocation2 + $0x8] sm:$0xff]  ;;  %v527_v23 = vld [vmem:[#allocation2 + $0x30] sm:$0xff]  ;;  %v525_v29 = vld [vmem:[#allocation2 + $0x20] sm:$0xff] }
  0x4e   : > { %1586 = vmatprep.subr.bf16.mxu0 %v1726_v20  ;;  %1651 = vmatprep.subr.bf16.mxu1 %v1726_v20  ;;  %v1475_v0 = vcombine.low %v519_v61, %v520_v62  ;;  %v530_v18 = vld [vmem:[#allocation2 + $0x48] sm:$0xff]  ;;  %v535_v24 = vld [vmem:[#allocation2 + $0x70] sm:$0xff]  ;;  %v528_v35 = vld [vmem:[#allocation2 + $0x38] sm:$0xff] }
  0x4f   : > { %v536_v36 = vld [vmem:[#allocation2 + $0x78] sm:$0xff]  ;;  %v526_v41 = vld [vmem:[#allocation2 + $0x28] sm:$0xff] }
  0x50   : > { %v534_v42 = vld [vmem:[#allocation2 + $0x68] sm:$0xff] }
  0x51   : > { %1587 = vmatpush3.bf16.msra.mxu0 %v1726_v20  ;;  %1659 = vmatpush3.bf16.msra.mxu1 %v1726_v20 }
  0x52   : > { %1588 = vmatprep.subr.bf16.mxu0 %v1727_v30  ;;  %1652 = vmatprep.subr.bf16.mxu1 %v1727_v30 }
  0x55   : > { %1589 = vmatpush3.bf16.msra.mxu0 %v1727_v30  ;;  %1660 = vmatpush3.bf16.msra.mxu1 %v1727_v30  ;;  %v533_v30 = vld [vmem:[#allocation2 + $0x60] sm:$0xff] }
  0x56   : > { %1590 = vmatprep.subr.bf16.mxu0 %v1728_v32  ;;  %1653 = vmatprep.subr.bf16.mxu1 %v1728_v32 }
  0x59   : > { %1591 = vmatpush3.bf16.msra.mxu0 %v1728_v32  ;;  %1661 = vmatpush3.bf16.msra.mxu1 %v1728_v32 }
  0x5a   : > { %1592 = vmatprep.subr.bf16.mxu0 %v1729_v33  ;;  %1654 = vmatprep.subr.bf16.mxu1 %v1729_v33 }
  0x5d   : > { %1593 = vmatpush3.bf16.msra.mxu0 %v1729_v33  ;;  %1662 = vmatpush3.bf16.msra.mxu1 %v1729_v33 }
  0x5e   : > { %1594 = vmatprep.subr.bf16.mxu0 %v1730_v34  ;;  %1655 = vmatprep.subr.bf16.mxu1 %v1730_v34 }
  0x61   : > { %1595 = vmatpush3.bf16.msra.mxu0 %v1730_v34  ;;  %1663 = vmatpush3.bf16.msra.mxu1 %v1730_v34 }
  0x64   : > { %1597 = vmatmul.mubr.bf16.vlgmr.msra.gmra.mxu0 %v1469_v51  ;;  %1605 = vmatmul.mubr.bf16.vlgmr.msra.gmra.mxu1 %v1473_v52 }
  0x65   : > { %1600 = vmatprep.mubr.bf16.mxu0 %v1470_v54  ;;  %1608 = vmatprep.mubr.bf16.mxu1 %v1474_v55 }
  0x6c   : > { %1601 = vmatmul.mubr.bf16.gmra.mxu0 %v1471_v63  ;;  %1609 = vmatmul.mubr.bf16.gmra.mxu1 %v1475_v0 }
 0x124   : > { %v1598_v3 = vpop.f32.mrf.mxu0  ;;  %v1606_v4 = vpop.f32.mrf.mxu1 }
 0x125   : > { %v748_v7 = vadd.f32 %v1598_v3, %v523_v1  ;;  %v756_v8 = vadd.f32 %v1606_v4, %v531_v2 }
 0x126   : > { %v683_v9 = vpop.f32.mrf.mxu0  ;;  %v715_v10 = vpop.f32.mrf.mxu1 }
 0x127   : > { %765 = vst.msk [vmem:[#allocation2 + $0x10] sm:$0xff] %vm762_vm1, %v748_v7  ;;  %773 = vst.msk [vmem:[#allocation2 + $0x50] sm:$0xff] %vm762_vm1, %v756_v8  ;;  %v746_v13 = vadd.f32 %v683_v9, %v521_v5  ;;  %v754_v14 = vadd.f32 %v715_v10, %v529_v6 }
 0x128   : > { %v1599_v15 = vpop.f32.mrf.mxu0  ;;  %v1607_v16 = vpop.f32.mrf.mxu1 }
 0x129   : > { %763 = vst.msk [vmem:[#allocation2] sm:$0xff] %vm762_vm1, %v746_v13  ;;  %771 = vst.msk [vmem:[#allocation2 + $0x40] sm:$0xff] %vm762_vm1, %v754_v14  ;;  %v749_v19 = vadd.f32 %v1599_v15, %v524_v11  ;;  %v757_v20 = vadd.f32 %v1607_v16, %v532_v12 }
 0x12a   : > { %v686_v21 = vpop.f32.mrf.mxu0  ;;  %v718_v22 = vpop.f32.mrf.mxu1 }
 0x12b   : > { %766 = vst.msk [vmem:[#allocation2 + $0x18] sm:$0xff] %vm762_vm1, %v749_v19  ;;  %774 = vst.msk [vmem:[#allocation2 + $0x58] sm:$0xff] %vm762_vm1, %v757_v20  ;;  %v747_v25 = vadd.f32 %v686_v21, %v522_v17  ;;  %v755_v26 = vadd.f32 %v718_v22, %v530_v18 }
 0x12c   : > { %v1602_v27 = vpop.f32.mrf.mxu0  ;;  %v1610_v28 = vpop.f32.mrf.mxu1 }
 0x12d   : > { %764 = vst.msk [vmem:[#allocation2 + $0x8] sm:$0xff] %vm762_vm1, %v747_v25  ;;  %772 = vst.msk [vmem:[#allocation2 + $0x48] sm:$0xff] %vm762_vm1, %v755_v26  ;;  %v752_v31 = vadd.f32 %v1602_v27, %v527_v23  ;;  %v760_v32 = vadd.f32 %v1610_v28, %v535_v24 }
 0x12e   : > { %v699_v33 = vpop.f32.mrf.mxu0  ;;  %v731_v34 = vpop.f32.mrf.mxu1 }
 0x12f   : > { %769 = vst.msk [vmem:[#allocation2 + $0x30] sm:$0xff] %vm762_vm1, %v752_v31  ;;  %777 = vst.msk [vmem:[#allocation2 + $0x70] sm:$0xff] %vm762_vm1, %v760_v32  ;;  %v750_v37 = vadd.f32 %v699_v33, %v525_v29  ;;  %v758_v38 = vadd.f32 %v731_v34, %v533_v30 }
 0x130   : > { %v1603_v39 = vpop.f32.mrf.mxu0  ;;  %v1611_v40 = vpop.f32.mrf.mxu1 }
 0x131   : > { %767 = vst.msk [vmem:[#allocation2 + $0x20] sm:$0xff] %vm762_vm1, %v750_v37  ;;  %775 = vst.msk [vmem:[#allocation2 + $0x60] sm:$0xff] %vm762_vm1, %v758_v38  ;;  %v753_v43 = vadd.f32 %v1603_v39, %v528_v35  ;;  %v761_v44 = vadd.f32 %v1611_v40, %v536_v36  ;;  %782 = sbr.rel (%p1484_p13) target bundleno = 675 (0x2a3), region = 97 }
 0x132   : > { %v702_v45 = vpop.f32.mrf.mxu0  ;;  %v734_v46 = vpop.f32.mrf.mxu1 }
 0x133   : > { %770 = vst.msk [vmem:[#allocation2 + $0x38] sm:$0xff] %vm762_vm1, %v753_v43  ;;  %778 = vst.msk [vmem:[#allocation2 + $0x78] sm:$0xff] %vm762_vm1, %v761_v44  ;;  %v751_v47 = vadd.f32 %v702_v45, %v526_v41  ;;  %v759_v48 = vadd.f32 %v734_v46, %v534_v42 }
 0x135   : > { %768 = vst.msk [vmem:[#allocation2 + $0x28] sm:$0xff] %vm762_vm1, %v751_v47  ;;  %776 = vst.msk [vmem:[#allocation2 + $0x68] sm:$0xff] %vm762_vm1, %v759_v48 }
 0x136   : > { %v801_v49 = vld [vmem:[%s1937_s27 + $0x10] sm:$0xff]  ;;  %v799_v50 = vld [vmem:[%s1937_s27] sm:$0xff]  ;;  %v1800_v51 = vmov 0   ;;  %v802_v52 = vld [vmem:[%s1937_s27 + $0x18] sm:$0xff]  ;;  %vm1320_vm2 = vcmask 257024  }
 0x137   : > { %1732 = vset.pattern.permute.xlu1 %v1800_v51  ;;  %1731 = vset.pattern.permute.xlu0 %v1800_v51  ;;  %v800_v53 = vld [vmem:[%s1937_s27 + $0x8] sm:$0xff]  ;;  %v803_v55 = vld [vmem:[%s1937_s27 + $0x20] sm:$0xff]  ;;  %v806_v59 = vld [vmem:[%s1937_s27 + $0x38] sm:$0xff] }
 0x138   : > { %827 = vperm.xlu1 %1732, %v801_v49   ;;  %817 = vperm.xlu0 %1731, %v799_v50   ;;  %v804_v54 = vld [vmem:[%s1937_s27 + $0x28] sm:$0xff]  ;;  %v1733_v56 = vld [vmem:[%s2128_s4] sm:$0xff]   ;;  %v805_v61 = vld [vmem:[%s1937_s27 + $0x30] sm:$0xff] }
 0x139   : > { %v1734_v57 = vld [vmem:[%s1932_s23] sm:$0xff]   ;;  %1630 = vmatprep.subr.bf16.mxu1 %v1733_v56  ;;  %v1735_v58 = vld [vmem:[%s1932_s23 + $0x8] sm:$0xff]   ;;  %v1737_v62 = vld [vmem:[%s1932_s23 + $0x10] sm:$0xff]  }
 0x13a   : > { %1631 = vmatpush3.bf16.msra.mxu1 %v1733_v56  ;;  %1632 = vmatprep.mubr.msk.bf16.mxu1 %vm762_vm1, %v1734_v57  ;;  %v1736_v60 = vld [vmem:[%s2129_s5] sm:$0xff]   ;;  %v808_v63 = vld [vmem:[%s1937_s27 + $0x48] sm:$0xff]  ;;  %v1738_v1 = vld [vmem:[%s1932_s23 + $0x18] sm:$0xff]  }
 0x13b   : > { %1612 = vmatprep.subr.bf16.mxu0 %v1736_v60  ;;  %v807_v0 = vld [vmem:[%s1937_s27 + $0x40] sm:$0xff]  ;;  %v810_v3 = vld [vmem:[%s1937_s27 + $0x58] sm:$0xff]  ;;  %v809_v4 = vld [vmem:[%s1937_s27 + $0x50] sm:$0xff] }
 0x13c   : > { %832 = vperm.xlu1 %1732, %v802_v52   ;;  %822 = vperm.xlu0 %1731, %v800_v53   ;;  %v1739_v2 = vld [vmem:[%s1932_s23 + $0x20] sm:$0xff]   ;;  %v812_v5 = vld [vmem:[%s1937_s27 + $0x68] sm:$0xff]  ;;  %v1741_v8 = vld [vmem:[%s1932_s23 + $0x30] sm:$0xff]  }
 0x13d   : > { %1633 = vmatmul.mubr.msk.bf16.vlgmr.msra.gmra.mxu1 %vm762_vm1, %v1735_v58  ;;  %1613 = vmatpush3.bf16.msra.mxu0 %v1736_v60  ;;  %v811_v6 = vld [vmem:[%s1937_s27 + $0x60] sm:$0xff]  ;;  %v1740_v7 = vld [vmem:[%s1932_s23 + $0x28] sm:$0xff]   ;;  %v814_v9 = vld [vmem:[%s1937_s27 + $0x78] sm:$0xff] }
 0x13e   : > { %1636 = vmatprep.mubr.msk.bf16.mxu1 %vm762_vm1, %v1737_v62  ;;  %v813_v10 = vld [vmem:[%s1937_s27 + $0x70] sm:$0xff]  ;;  %v1742_v11 = vld [vmem:[%s1932_s23 + $0x38] sm:$0xff]   ;;  %v783_v15 = vld [vmem:[#allocation2] sm:$0xff] }
 0x13f   : > { %v785_v14 = vld [vmem:[#allocation2 + $0x10] sm:$0xff]  ;;  %v786_v16 = vld [vmem:[#allocation2 + $0x18] sm:$0xff]  ;;  %v784_v17 = vld [vmem:[#allocation2 + $0x8] sm:$0xff] }
 0x140   : > { %842 = vperm.xlu1 %1732, %v804_v54   ;;  %837 = vperm.xlu0 %1731, %v803_v55   ;;  %v788_v24 = vld [vmem:[#allocation2 + $0x28] sm:$0xff]  ;;  %v787_v25 = vld [vmem:[#allocation2 + $0x20] sm:$0xff]  ;;  %v790_v32 = vld [vmem:[#allocation2 + $0x38] sm:$0xff] }
 0x141   : > { %v789_v33 = vld [vmem:[#allocation2 + $0x30] sm:$0xff]  ;;  %v792_v39 = vld [vmem:[#allocation2 + $0x48] sm:$0xff]  ;;  %v791_v40 = vld [vmem:[#allocation2 + $0x40] sm:$0xff] }
 0x142   : > { %v794_v46 = vld [vmem:[#allocation2 + $0x58] sm:$0xff]  ;;  %v793_v47 = vld [vmem:[#allocation2 + $0x50] sm:$0xff]  ;;  %v796_v53 = vld [vmem:[#allocation2 + $0x68] sm:$0xff] }
 0x143   : > { %v795_v54 = vld [vmem:[#allocation2 + $0x60] sm:$0xff]  ;;  %v798_v60 = vld [vmem:[#allocation2 + $0x78] sm:$0xff] }
 0x144   : > { %852 = vperm.xlu1 %1732, %v806_v59   ;;  %847 = vperm.xlu0 %1731, %v805_v61   ;;  %v797_v61 = vld [vmem:[#allocation2 + $0x70] sm:$0xff] }
 0x145   : > { %1637 = vmatmul.mubr.msk.bf16.gmra.mxu1 %vm762_vm1, %v1738_v1 }
 0x146   : > { %1640 = vmatprep.mubr.msk.bf16.mxu1 %vm762_vm1, %v1739_v2 }
 0x148   : > { %862 = vperm.xlu1 %1732, %v808_v63   ;;  %857 = vperm.xlu0 %1731, %v807_v0  }
 0x14c   : > { %872 = vperm.xlu1 %1732, %v810_v3   ;;  %867 = vperm.xlu0 %1731, %v809_v4  }
 0x14d   : > { %1641 = vmatmul.mubr.msk.bf16.gmra.mxu1 %vm762_vm1, %v1740_v7 }
 0x14e   : > { %1644 = vmatprep.mubr.msk.bf16.mxu1 %vm762_vm1, %v1741_v8 }
 0x150   : > { %882 = vperm.xlu1 %1732, %v812_v5   ;;  %877 = vperm.xlu0 %1731, %v811_v6  }
 0x154   : > { %892 = vperm.xlu1 %1732, %v814_v9   ;;  %887 = vperm.xlu0 %1731, %v813_v10  }
 0x155   : > { %1645 = vmatmul.mubr.msk.bf16.gmra.mxu1 %vm762_vm1, %v1742_v11 }
 0x1b3   : > { %v828_v12 = vpop.permute.xlu1 %827  ;;  %v818_v13 = vpop.permute.xlu0 %817 }
 0x1b4   : > { %v897_v20 = vmul.f32 %v828_v12, %v785_v14  ;;  %v895_v21 = vmul.f32 %v818_v13, %v783_v15  ;;  %v2053_v13 = vld [vmem:[%s2130_s6] ss:$0 sm:$0xff] }
 0x1b7   : > { %v833_v18 = vpop.permute.xlu1 %832  ;;  %v823_v19 = vpop.permute.xlu0 %822 }
 0x1b8   : > { %v898_v22 = vmul.f32 %v833_v18, %v786_v16  ;;  %v896_v23 = vmul.f32 %v823_v19, %v784_v17 }
 0x1ba   : > { %v912_v26 = vpack.c.bf16 %v898_v22, %v897_v20  ;;  %v911_v27 = vpack.c.bf16 %v896_v23, %v895_v21 }
 0x1bb   : > { %v843_v28 = vpop.permute.xlu1 %842  ;;  %v838_v29 = vpop.permute.xlu0 %837 }
 0x1bc   : > { %v900_v30 = vmul.f32 %v843_v28, %v788_v24  ;;  %v899_v31 = vmul.f32 %v838_v29, %v787_v25  ;;  %1614 = vmatprep.mubr.msk.bf16.mxu0 %vm762_vm1, %v911_v27 }
 0x1bd   : > { %1615 = vmatmul.mubr.msk.bf16.vlgmr.msra.gmra.mxu0 %vm762_vm1, %v912_v26 }
 0x1be   : > { %v913_v34 = vpack.c.bf16 %v900_v30, %v899_v31 }
 0x1bf   : > { %v853_v35 = vpop.permute.xlu1 %852  ;;  %v848_v36 = vpop.permute.xlu0 %847 }
 0x1c0   : > { %v902_v37 = vmul.f32 %v853_v35, %v790_v32  ;;  %v901_v38 = vmul.f32 %v848_v36, %v789_v33  ;;  %1618 = vmatprep.mubr.msk.bf16.mxu0 %vm762_vm1, %v913_v34 }
 0x1c2   : > { %v914_v41 = vpack.c.bf16 %v902_v37, %v901_v38 }
 0x1c3   : > { %v863_v42 = vpop.permute.xlu1 %862  ;;  %v858_v43 = vpop.permute.xlu0 %857 }
 0x1c4   : > { %v904_v44 = vmul.f32 %v863_v42, %v792_v39  ;;  %v903_v45 = vmul.f32 %v858_v43, %v791_v40 }
 0x1c5   : > { %1619 = vmatmul.mubr.msk.bf16.gmra.mxu0 %vm762_vm1, %v914_v41 }
 0x1c6   : > { %v915_v48 = vpack.c.bf16 %v904_v44, %v903_v45 }
 0x1c7   : > { %v873_v49 = vpop.permute.xlu1 %872  ;;  %v868_v50 = vpop.permute.xlu0 %867 }
 0x1c8   : > { %v906_v51 = vmul.f32 %v873_v49, %v794_v46  ;;  %v905_v52 = vmul.f32 %v868_v50, %v793_v47  ;;  %1622 = vmatprep.mubr.msk.bf16.mxu0 %vm762_vm1, %v915_v48 }
 0x1ca   : > { %v916_v55 = vpack.c.bf16 %v906_v51, %v905_v52 }
 0x1cb   : > { %v883_v56 = vpop.permute.xlu1 %882  ;;  %v878_v57 = vpop.permute.xlu0 %877 }
 0x1cc   : > { %v908_v58 = vmul.f32 %v883_v56, %v796_v53  ;;  %v907_v59 = vmul.f32 %v878_v57, %v795_v54 }
 0x1cd   : > { %1623 = vmatmul.mubr.msk.bf16.gmra.mxu0 %vm762_vm1, %v916_v55 }
 0x1ce   : > { %v917_v62 = vpack.c.bf16 %v908_v58, %v907_v59 }
 0x1cf   : > { %v893_v63 = vpop.permute.xlu1 %892  ;;  %v888_v0 = vpop.permute.xlu0 %887 }
 0x1d0   : > { %v910_v1 = vmul.f32 %v893_v63, %v798_v60  ;;  %v909_v2 = vmul.f32 %v888_v0, %v797_v61  ;;  %1626 = vmatprep.mubr.msk.bf16.mxu0 %vm762_vm1, %v917_v62 }
 0x1d2   : > { %v918_v3 = vpack.c.bf16 %v910_v1, %v909_v2 }
 0x1d5   : > { %1627 = vmatmul.mubr.msk.bf16.gmra.mxu0 %vm762_vm1, %v918_v3 }
 0x1fd   : > { %v1634_v4 = vpop.f32.mrf.mxu1 }
 0x1ff   : > { %v1170_v5 = vpop.f32.mrf.mxu1 }
 0x201   : > { %v1635_v6 = vpop.f32.mrf.mxu1 }
 0x203   : > { %v1173_v7 = vpop.f32.mrf.mxu1 }
 0x205   : > { %v1638_v8 = vpop.f32.mrf.mxu1 }
 0x207   : > { %v1186_v9 = vpop.f32.mrf.mxu1 }
 0x209   : > { %v1639_v10 = vpop.f32.mrf.mxu1 }
 0x20b   : > { %v1189_v11 = vpop.f32.mrf.mxu1 }
 0x20d   : > { %v1642_v16 = vpop.f32.mrf.mxu1 }
 0x20f   : > { %v1202_v24 = vpop.f32.mrf.mxu1 }
 0x211   : > { %v1643_v33 = vpop.f32.mrf.mxu1 }
 0x213   : > { %v1205_v42 = vpop.f32.mrf.mxu1 }
 0x215   : > { %v1646_v51 = vpop.f32.mrf.mxu1 }
 0x217   : > { %v1218_v59 = vpop.f32.mrf.mxu1 }
 0x27d   : > { %v1616_v12 = vpop.f32.mrf.mxu0 }
 0x27e   : > { %v1179_v14 = vadd.f32 %v1634_v4, %v1616_v12  ;;  %v1647_v4 = vpop.f32.mrf.mxu1 }
 0x27f   : > { %v1003_v15 = vpop.f32.mrf.mxu0 }
 0x280   : > { %v1242_v17 = vadd.f32 %v2053_v13, %v1179_v14  ;;  %v1171_v18 = vadd.f32 %v1170_v5, %v1003_v15  ;;  %v1221_v14 = vpop.f32.mrf.mxu1 }
 0x281   : > { %v1617_v19 = vpop.f32.mrf.mxu0 }
 0x282   : > { %v1532_v20 = vpack.c.bf16 %v1242_v17, %v1242_v17  ;;  %v1240_v21 = vadd.f32 %v2053_v13, %v1171_v18  ;;  %v1182_v22 = vadd.f32 %v1635_v6, %v1617_v19 }
 0x283   : > { %v1006_v23 = vpop.f32.mrf.mxu0 }
 0x284   : > { %1323 = vst.msk [vmem:[%s1942_s9 + $0x8] sm:$0xf] %vm1320_vm2, %v1532_v20  ;;  %v1530_v25 = vpack.c.bf16 %v1240_v21, %v1240_v21  ;;  %v1243_v26 = vadd.f32 %v2053_v13, %v1182_v22  ;;  %v1174_v27 = vadd.f32 %v1173_v7, %v1006_v23 }
 0x285   : > { %v1620_v28 = vpop.f32.mrf.mxu0 }
 0x286   : > { %1321 = vst.msk [vmem:[%s1942_s9] sm:$0xf] %vm1320_vm2, %v1530_v25  ;;  %v1533_v29 = vpack.c.bf16 %v1243_v26, %v1243_v26  ;;  %v1241_v30 = vadd.f32 %v2053_v13, %v1174_v27  ;;  %v1195_v31 = vadd.f32 %v1638_v8, %v1620_v28 }
 0x287   : > { %v1019_v32 = vpop.f32.mrf.mxu0 }
 0x288   : > { %1324 = vst.msk [vmem:[%s1942_s9 + $0xc] sm:$0xf] %vm1320_vm2, %v1533_v29  ;;  %v1531_v34 = vpack.c.bf16 %v1241_v30, %v1241_v30  ;;  %v1246_v35 = vadd.f32 %v2053_v13, %v1195_v31  ;;  %v1187_v36 = vadd.f32 %v1186_v9, %v1019_v32 }
 0x289   : > { %v1621_v37 = vpop.f32.mrf.mxu0 }
 0x28a   : > { %1322 = vst.msk [vmem:[%s1942_s9 + $0x4] sm:$0xf] %vm1320_vm2, %v1531_v34  ;;  %v1536_v38 = vpack.c.bf16 %v1246_v35, %v1246_v35  ;;  %v1244_v39 = vadd.f32 %v2053_v13, %v1187_v36  ;;  %v1198_v40 = vadd.f32 %v1639_v10, %v1621_v37 }
 0x28b   : > { %v1022_v41 = vpop.f32.mrf.mxu0 }
 0x28c   : > { %1327 = vst.msk [vmem:[%s1942_s9 + $0x18] sm:$0xf] %vm1320_vm2, %v1536_v38  ;;  %v1534_v43 = vpack.c.bf16 %v1244_v39, %v1244_v39  ;;  %v1247_v44 = vadd.f32 %v2053_v13, %v1198_v40  ;;  %v1190_v45 = vadd.f32 %v1189_v11, %v1022_v41 }
 0x28d   : > { %v1624_v46 = vpop.f32.mrf.mxu0 }
 0x28e   : > { %1325 = vst.msk [vmem:[%s1942_s9 + $0x10] sm:$0xf] %vm1320_vm2, %v1534_v43  ;;  %v1537_v47 = vpack.c.bf16 %v1247_v44, %v1247_v44  ;;  %v1245_v48 = vadd.f32 %v2053_v13, %v1190_v45  ;;  %v1211_v49 = vadd.f32 %v1642_v16, %v1624_v46 }
 0x28f   : > { %v1035_v50 = vpop.f32.mrf.mxu0 }
 0x290   : > { %1328 = vst.msk [vmem:[%s1942_s9 + $0x1c] sm:$0xf] %vm1320_vm2, %v1537_v47  ;;  %v1535_v52 = vpack.c.bf16 %v1245_v48, %v1245_v48  ;;  %v1250_v53 = vadd.f32 %v2053_v13, %v1211_v49  ;;  %v1203_v54 = vadd.f32 %v1202_v24, %v1035_v50 }
 0x291   : > { %v1625_v55 = vpop.f32.mrf.mxu0 }
 0x292   : > { %1326 = vst.msk [vmem:[%s1942_s9 + $0x14] sm:$0xf] %vm1320_vm2, %v1535_v52  ;;  %v1540_v56 = vpack.c.bf16 %v1250_v53, %v1250_v53  ;;  %v1248_v57 = vadd.f32 %v2053_v13, %v1203_v54  ;;  %v1214_v58 = vadd.f32 %v1643_v33, %v1625_v55 }
 0x293   : > { %v1038_v60 = vpop.f32.mrf.mxu0 }
 0x294   : > { %1331 = vst.msk [vmem:[%s1942_s9 + $0x28] sm:$0xf] %vm1320_vm2, %v1540_v56  ;;  %v1538_v61 = vpack.c.bf16 %v1248_v57, %v1248_v57  ;;  %v1251_v62 = vadd.f32 %v2053_v13, %v1214_v58  ;;  %v1206_v63 = vadd.f32 %v1205_v42, %v1038_v60 }
 0x295   : > { %v1628_v0 = vpop.f32.mrf.mxu0 }
 0x296   : > { %1329 = vst.msk [vmem:[%s1942_s9 + $0x20] sm:$0xf] %vm1320_vm2, %v1538_v61  ;;  %v1541_v1 = vpack.c.bf16 %v1251_v62, %v1251_v62  ;;  %v1249_v2 = vadd.f32 %v2053_v13, %v1206_v63  ;;  %v1227_v3 = vadd.f32 %v1646_v51, %v1628_v0 }
 0x297   : > { %v1051_v5 = vpop.f32.mrf.mxu0 }
 0x298   : > { %1332 = vst.msk [vmem:[%s1942_s9 + $0x2c] sm:$0xf] %vm1320_vm2, %v1541_v1  ;;  %v1539_v6 = vpack.c.bf16 %v1249_v2, %v1249_v2  ;;  %v1254_v7 = vadd.f32 %v2053_v13, %v1227_v3  ;;  %v1219_v8 = vadd.f32 %v1218_v59, %v1051_v5 }
 0x299   : > { %v1629_v9 = vpop.f32.mrf.mxu0 }
 0x29a   : > { %1330 = vst.msk [vmem:[%s1942_s9 + $0x24] sm:$0xf] %vm1320_vm2, %v1539_v6  ;;  %v1544_v10 = vpack.c.bf16 %v1254_v7, %v1254_v7  ;;  %v1252_v11 = vadd.f32 %v2053_v13, %v1219_v8  ;;  %v1230_v12 = vadd.f32 %v1647_v4, %v1629_v9 }
 0x29b   : > { %v1054_v15 = vpop.f32.mrf.mxu0 }
 0x29c   : > { %1335 = vst.msk [vmem:[%s1942_s9 + $0x38] sm:$0xf] %vm1320_vm2, %v1544_v10  ;;  %v1542_v16 = vpack.c.bf16 %v1252_v11, %v1252_v11  ;;  %v1255_v17 = vadd.f32 %v2053_v13, %v1230_v12  ;;  %v1222_v18 = vadd.f32 %v1221_v14, %v1054_v15 }
 0x29e   : > { %1333 = vst.msk [vmem:[%s1942_s9 + $0x30] sm:$0xf] %vm1320_vm2, %v1542_v16  ;;  %v1545_v19 = vpack.c.bf16 %v1255_v17, %v1255_v17  ;;  %v1253_v20 = vadd.f32 %v2053_v13, %v1222_v18 }
 0x2a0   : > { %1336 = vst.msk [vmem:[%s1942_s9 + $0x3c] sm:$0xf] %vm1320_vm2, %v1545_v19  ;;  %v1543_v21 = vpack.c.bf16 %v1253_v20, %v1253_v20 }
 0x2a2   : > { %1334 = vst.msk [vmem:[%s1942_s9 + $0x34] sm:$0xf] %vm1320_vm2, %v1543_v21 }
 0x2a3 PF: > { %s17_s30 = sadd.s32 1, %s1797_s30   ;;  %s2136_s18 = sld [smem:[#allocation4_spill]] }
 0x2a4   : > { %p14_p0 = scmp.ge.s32.totalorder %s17_s30, 11   ;;  %s2137_s24 = smov %s1777_s25 }
 0x2a5   : > { %s2138_s25 = smov %s1892_s14  ;;  %s2139_s26 = smov %s1789_s28 }
 0x2a6   : > { %s2140_s27 = smov %s1793_s29  ;;  %s2141_s28 = smov %s2144_s8 }
 0x2a7   :  { %16 = sbr.rel (!%p14_p0) target bundleno = 6 (0x6), region = 141 }
 0x2a9   : > { %s2142_s29 = smov %s2136_s18 }

// kernel: graphsage_forward.6
= control target key start
LH: loop header
LB: loop body
LE: loop exit
PB: predicated region body
PF: predicated region fallthrough
CT: control target
= control target key end

     0   :  { %s661_s9 = smov 0   ;;  %s695_s0 = inlined_call_operand.vmem [shape: bf16[384,32], index: 0, kind: input, shape index: {}]   ;;  %s696_s1 = inlined_call_operand.vmem [shape: bf16[32,128], index: 1, kind: input, shape index: {}]   ;;  %s697_s2 = inlined_call_operand.vmem [shape: bf16[384,128], index: 2, kind: output, shape index: {}]  }
   0x1 LB: > { %s478_s10 = sadd.s32 4294967295, %s644_s9   ;;  %p482_p0 = scmp.ge.s32.totalorder %s644_s9, 1  ;;  %s644_s9 = sphi %s661_s9, %s12_s9  }
   0x2   : > { %p113_p1 = scmp.lt.s32.totalorder %s644_s9, 4 }
   0x4   : > { %p114_p2 = pnand %p482_p0, %p113_p1 }
   0x5   : > { %s483_s13 = sshll.u32 (!%p114_p2), %s478_s10, 4 }
   0x6   : > { %117 = sbr.rel (%p114_p2) target bundleno = 230 (0xe6), region = 28  ;;  %p136_p3 = scmp.lt.s32.totalorder (!%p114_p2), %s483_s13, 47 }
   0xb   : > { %v628_v0 = vld [vmem:[%s696_s1 + $0x8] sm:$0xff]   ;;  %v629_v1 = vld [vmem:[%s696_s1] sm:$0xff]   ;;  %s699_s13 = smov (!%p136_p3, %s483_s13), 47  ;;  %vm220_vm0 = vcmask 261120  }
   0xc   : > { %596 = vmatprep.subr.bf16.mxu0 %v628_v0  ;;  %616 = vmatprep.subr.bf16.mxu1 %v628_v0  ;;  %s484_s16 = sshll.u32 %s699_s13, 2 }
   0xd   : > { %597 = vmatpush3.bf16.msra.mxu0 %v628_v0  ;;  %618 = vmatpush3.bf16.msra.mxu1 %v628_v0  ;;  %s139_s19 = scalar_lea.vmem %s695_s0, %s484_s16  ;;  %s145_s22 = scalar_lea.vmem %s697_s2, %s484_s16 }
   0xe   : > { %598 = vmatprep.subr.bf16.mxu0 %v629_v1  ;;  %617 = vmatprep.subr.bf16.mxu1 %v629_v1  ;;  %v630_v2 = vld [vmem:[%s139_s19] sm:$0xff]   ;;  %v632_v4 = vld [vmem:[%s139_s19 + $0x8] sm:$0xff]   ;;  %v634_v6 = vld [vmem:[%s139_s19 + $0x10] sm:$0xff]  }
   0xf   : > { %v631_v3 = vld [vmem:[%s139_s19 + $0x20] sm:$0xff]   ;;  %600 = vmatprep.mubr.msk.bf16.mxu0 %vm220_vm0, %v630_v2  ;;  %v633_v5 = vld [vmem:[%s139_s19 + $0x28] sm:$0xff]   ;;  %v635_v7 = vld [vmem:[%s139_s19 + $0x30] sm:$0xff]  }
  0x10   : > { %608 = vmatprep.mubr.msk.bf16.mxu1 %vm220_vm0, %v631_v3  ;;  %v636_v8 = vld [vmem:[%s139_s19 + $0x18] sm:$0xff]  }
  0x11   : > { %599 = vmatpush3.bf16.msra.mxu0 %v629_v1  ;;  %619 = vmatpush3.bf16.msra.mxu1 %v629_v1  ;;  %v637_v9 = vld [vmem:[%s139_s19 + $0x38] sm:$0xff]  }
  0x14   : > { %601 = vmatmul.mubr.msk.bf16.vlgmr.msra.gmra.mxu0 %vm220_vm0, %v632_v4  ;;  %609 = vmatmul.mubr.msk.bf16.vlgmr.msra.gmra.mxu1 %vm220_vm0, %v633_v5 }
  0x15   : > { %604 = vmatprep.mubr.msk.bf16.mxu0 %vm220_vm0, %v634_v6  ;;  %612 = vmatprep.mubr.msk.bf16.mxu1 %vm220_vm0, %v635_v7 }
  0x1c   : > { %605 = vmatmul.mubr.msk.bf16.gmra.mxu0 %vm220_vm0, %v636_v8  ;;  %613 = vmatmul.mubr.msk.bf16.gmra.mxu1 %vm220_vm0, %v637_v9 }
  0xd4   : > { %v602_v10 = vpop.f32.mrf.mxu0  ;;  %v610_v11 = vpop.f32.mrf.mxu1 }
  0xd6   : > { %v279_v12 = vpop.f32.mrf.mxu0  ;;  %v311_v13 = vpop.f32.mrf.mxu1 }
  0xd8   : > { %v603_v14 = vpop.f32.mrf.mxu0  ;;  %v611_v16 = vpop.f32.mrf.mxu1 }
  0xd9   : > { %v547_v15 = vpack.c.bf16 %v603_v14, %v602_v10  ;;  %v567_v17 = vpack.c.bf16 %v611_v16, %v610_v11 }
  0xda   : > { %v282_v18 = vpop.f32.mrf.mxu0  ;;  %v314_v20 = vpop.f32.mrf.mxu1 }
  0xdb   : > { %579 = vst [vmem:[%s145_s22 + $0x8] sm:$0xff] %v547_v15   ;;  %v542_v19 = vpack.c.bf16 %v282_v18, %v279_v12  ;;  %583 = vst [vmem:[%s145_s22 + $0x28] sm:$0xff] %v567_v17   ;;  %v562_v21 = vpack.c.bf16 %v314_v20, %v311_v13 }
  0xdc   : > { %v606_v22 = vpop.f32.mrf.mxu0  ;;  %v614_v23 = vpop.f32.mrf.mxu1 }
  0xdd   : > { %543 = vst [vmem:[%s145_s22] sm:$0xff] %v542_v19   ;;  %582 = vst [vmem:[%s145_s22 + $0x20] sm:$0xff] %v562_v21  }
  0xde   : > { %v295_v24 = vpop.f32.mrf.mxu0  ;;  %v327_v25 = vpop.f32.mrf.mxu1 }
  0xe0   : > { %v607_v26 = vpop.f32.mrf.mxu0  ;;  %v615_v28 = vpop.f32.mrf.mxu1 }
  0xe1   : > { %v557_v27 = vpack.c.bf16 %v607_v26, %v606_v22  ;;  %v577_v29 = vpack.c.bf16 %v615_v28, %v614_v23 }
  0xe2   : > { %v298_v30 = vpop.f32.mrf.mxu0  ;;  %v330_v32 = vpop.f32.mrf.mxu1 }
  0xe3   : > { %581 = vst [vmem:[%s145_s22 + $0x18] sm:$0xff] %v557_v27   ;;  %v552_v31 = vpack.c.bf16 %v298_v30, %v295_v24  ;;  %585 = vst [vmem:[%s145_s22 + $0x38] sm:$0xff] %v577_v29   ;;  %v572_v33 = vpack.c.bf16 %v330_v32, %v327_v25 }
  0xe5   : > { %580 = vst [vmem:[%s145_s22 + $0x10] sm:$0xff] %v552_v31   ;;  %584 = vst [vmem:[%s145_s22 + $0x30] sm:$0xff] %v572_v33  }
  0xe6 PF: > { %s12_s9 = sadd.s32 1, %s644_s9  }
  0xe7   : > { %p9_p4 = scmp.ge.s32.totalorder %s12_s9, 5  }
  0xe9   :  { %11 = sbr.rel (!%p9_p4) target bundleno = 1 (0x1), region = 58 }

// kernel: graphsage_forward.5
= control target key start
LH: loop header
LB: loop body
LE: loop exit
PB: predicated region body
PF: predicated region fallthrough
CT: control target
= control target key end

     0   :  { %s2156_s0 = inlined_call_operand.vmem [shape: s8[384,384], index: 0, kind: input, shape index: {}]   ;;  %s2157_s1 = inlined_call_operand.vmem [shape: bf16[384,32], index: 1, kind: input, shape index: {}, may-alias: {1,2}]   ;;  %s2158_s2 = inlined_call_operand.vmem [shape: bf16[384,32], index: 2, kind: input, shape index: {}, may-alias: {1,2}]   ;;  %s2159_s3 = inlined_call_operand.vmem [shape: f32[384,1], index: 3, kind: input, shape index: {}]   ;;  %s2160_s4 = inlined_call_operand.vmem [shape: bf16[32,32], index: 4, kind: input, shape index: {}]   ;;  %s2161_s5 = inlined_call_operand.vmem [shape: bf16[32,32], index: 5, kind: input, shape index: {}]   ;;  %s2162_s6 = inlined_call_operand.vmem [shape: f32[1,32], index: 6, kind: input, shape index: {}]   ;;  %s2163_s7 = inlined_call_operand.vmem [shape: bf16[384,32], index: 7, kind: output, shape index: {}]  }
   0x1   :  { %2165 = sst [smem:[#allocation5_spill]] %s2156_s0 }
   0x2   :  { %s1867_s24 = smov 0   ;;  %s1869_s25 = smov 0  }
   0x3   :  { %s1871_s26 = smov 0   ;;  %s1873_s27 = smov 0  }
   0x4   :  { %s1875_s28 = smov 0   ;;  %s1877_s29 = smov 0  }
   0x5   :  { %s1879_s30 = smov 0  }
   0x6 LB: > { %s26_s8 = sadd.s32 1, %s1815_s28  ;;  %s29_s9 = sadd.s32 1, %s1819_s29  ;;  %s1823_s30 = sphi %s1879_s30, %s17_s30   ;;  %s1819_s29 = sphi %s1877_s29, %s2174_s29   ;;  %s1815_s28 = sphi %s1875_s28, %s2173_s28   ;;  %s1811_s27 = sphi %s1873_s27, %s2172_s27   ;;  %s1807_s26 = sphi %s1871_s26, %s2171_s26   ;;  %s1803_s25 = sphi %s1869_s25, %s2170_s25   ;;  %s1799_s24 = sphi %s1867_s24, %s2169_s24  }
   0x7   : > { %p27_p0 = scmp.ge.s32.totalorder %s26_s8, 3  ;;  %p45_p1 = scmp.ne.s32.totalorder %s1803_s25, %s1799_s24 }
   0x8   : > { %p46_p2 = scmp.eq.s32.totalorder %s1823_s30, 0  ;;  %s38_s13 = sadd.s32 1, %s1803_s25 }
   0x9   : > { %s2176_s8 = smov (%p27_p0, %s26_s8), 0  ;;  %s2178_s9 = smov (!%p27_p0, %s29_s9), %s1819_s29 }
   0xa   : > { %p47_p3 = por %p46_p2, %p45_p1  ;;  %p31_p4 = scmp.ge.s32.totalorder %s2178_s9, 3 }
   0xb   : > { %s34_s10 = ssub.s32 %s1815_s28, %s2176_s8  ;;  %p1468_p6 = scmp.ge.s32.totalorder %s1823_s30, 9 }
   0xc   : > { %s2180_s9 = smov (%p31_p4, %s2178_s9), 0 }
   0xd   : > { %2166 = sst [smem:[#allocation4_spill]] %s2180_s9  ;;  %s33_s11 = ssub.s32 %s1819_s29, %s2180_s9 }
   0xe   : > { %s35_s12 = sor.u32 %s34_s10, %s33_s11  ;;  %247 = sbr.rel (%p1468_p6) target bundleno = 39 (0x27), region = 28 }
   0xf   : > { %p36_p5 = scmp.eq.s32.totalorder %s35_s12, 0 }
  0x11   : > { %s1918_s14 = scalar_select %p36_p5, %s1803_s25, %s38_s13  }
  0x13   : > { %250 = sbr.rel (!%p47_p3) target bundleno = 39 (0x27), region = 32  ;;  %s252_s15 = sand.u32 (%p47_p3), 1, %s1803_s25  }
  0x14   : > { %s1688_s16 = smul.u32 (%p47_p3), 48, %s1819_s29  ;;  %s1469_s17 = sshll.u32 (%p47_p3), %s252_s15, 5 }
  0x15   : > { %s2167_s0 = sld [smem:[#allocation5_spill]] (%p47_p3)  ;;  %s254_s23 = scalar_lea.vmem (%p47_p3), [#allocation3], %s1469_s17 }
  0x16   : > { %s257_s18 = sadd.s32 (%p47_p3), %s1815_s28, %s1688_s16 }
  0x17   : > { %s1472_s19 = sshll.u32 (%p47_p3), %s257_s18, 1 }
  0x1b   : > { %s1927_s22 = scalar_lea.vmem %s2167_s0, %s1472_s19 }
  0x1c   : > { %v276_v0 = vld [vmem:[%s1927_s22] sm:$0x3]  ;;  %v278_v1 = vld [vmem:[%s1927_s22 + $0x6] sm:$0x3]  ;;  %v280_v2 = vld [vmem:[%s1927_s22 + $0xc] sm:$0x3] }
  0x1d   : > { %277 = vst [vmem:[%s254_s23] sm:$0x3] %v276_v0  ;;  %279 = vst [vmem:[%s254_s23 + $0x2] sm:$0x3] %v278_v1  ;;  %v282_v3 = vld [vmem:[%s1927_s22 + $0x12] sm:$0x3] }
  0x1e   : > { %281 = vst [vmem:[%s254_s23 + $0x4] sm:$0x3] %v280_v2  ;;  %v284_v4 = vld [vmem:[%s1927_s22 + $0x18] sm:$0x3]  ;;  %v286_v5 = vld [vmem:[%s1927_s22 + $0x1e] sm:$0x3] }
  0x1f   : > { %283 = vst [vmem:[%s254_s23 + $0x6] sm:$0x3] %v282_v3  ;;  %285 = vst [vmem:[%s254_s23 + $0x8] sm:$0x3] %v284_v4  ;;  %v288_v6 = vld [vmem:[%s1927_s22 + $0x24] sm:$0x3] }
  0x20   : > { %287 = vst [vmem:[%s254_s23 + $0xa] sm:$0x3] %v286_v5  ;;  %v290_v7 = vld [vmem:[%s1927_s22 + $0x2a] sm:$0x3]  ;;  %v292_v8 = vld [vmem:[%s1927_s22 + $0x30] sm:$0x3] }
  0x21   : > { %289 = vst [vmem:[%s254_s23 + $0xc] sm:$0x3] %v288_v6  ;;  %291 = vst [vmem:[%s254_s23 + $0xe] sm:$0x3] %v290_v7  ;;  %v294_v9 = vld [vmem:[%s1927_s22 + $0x36] sm:$0x3] }
  0x22   : > { %293 = vst [vmem:[%s254_s23 + $0x10] sm:$0x3] %v292_v8  ;;  %v296_v10 = vld [vmem:[%s1927_s22 + $0x3c] sm:$0x3]  ;;  %v298_v11 = vld [vmem:[%s1927_s22 + $0x42] sm:$0x3] }
  0x23   : > { %295 = vst [vmem:[%s254_s23 + $0x12] sm:$0x3] %v294_v9  ;;  %297 = vst [vmem:[%s254_s23 + $0x14] sm:$0x3] %v296_v10  ;;  %v300_v12 = vld [vmem:[%s1927_s22 + $0x48] sm:$0x3] }
  0x24   : > { %299 = vst [vmem:[%s254_s23 + $0x16] sm:$0x3] %v298_v11  ;;  %v302_v13 = vld [vmem:[%s1927_s22 + $0x4e] sm:$0x3]  ;;  %v304_v14 = vld [vmem:[%s1927_s22 + $0x54] sm:$0x3] }
  0x25   : > { %301 = vst [vmem:[%s254_s23 + $0x18] sm:$0x3] %v300_v12  ;;  %303 = vst [vmem:[%s254_s23 + $0x1a] sm:$0x3] %v302_v13  ;;  %v306_v15 = vld [vmem:[%s1927_s22 + $0x5a] sm:$0x3] }
  0x26   : > { %305 = vst [vmem:[%s254_s23 + $0x1c] sm:$0x3] %v304_v14  ;;  %307 = vst [vmem:[%s254_s23 + $0x1e] sm:$0x3] %v306_v15 }
  0x27 PF: > { %p1473_p7 = scmp.ge.s32.totalorder %s1823_s30, 1  ;;  %p389_p8 = scmp.lt.s32.totalorder %s1823_s30, 10 }
  0x29   : > { %p390_p9 = pnand %p1473_p7, %p389_p8 }
  0x2a   : > { %s396_s10 = sand.u32 (!%p390_p9), 1, %s1799_s24   ;;  %s1475_s11 = sshll.u32 (!%p390_p9), %s1807_s26, 4 }
  0x2b   : > { %393 = sbr.rel (%p390_p9) target bundleno = 675 (0x2a3), region = 85  ;;  %s1474_s12 = sshll.u32 (!%p390_p9), %s396_s10, 5 }
  0x2c   : > { %p444_p10 = scmp.lt.s32.totalorder (!%p390_p9), %s1475_s11, 47  ;;  %s1477_s13 = sshll.u32 (!%p390_p9), %s1811_s27, 4 }
  0x2d   : > { %p450_p11 = scmp.lt.s32.totalorder (!%p390_p9), %s1477_s13, 47  ;;  %p1483_p12 = scmp.ne.s32.totalorder (!%p390_p9), %s1807_s26, 0 }
  0x30   : > { %s2182_s11 = smov (!%p444_p10, %s1475_s11), 47  ;;  %s2184_s13 = smov (!%p450_p11, %s1477_s13), 47 }
  0x31   : > { %s1476_s15 = sshll.u32 %s2182_s11, 2  ;;  %s1478_s19 = sshll.u32 %s2184_s13, 2 }
  0x32   : > { %s1953_s18 = scalar_lea.vmem %s2157_s1, %s1476_s15  ;;  %s1480_s20 = sshll.u32 %s2184_s13, 3 }
  0x33   : > { %s1958_s23 = scalar_lea.vmem %s2158_s2, %s1478_s19  ;;  %s1963_s27 = scalar_lea.vmem %s2159_s3, %s1480_s20 }
  0x34   : > { %s1968_s9 = scalar_lea.vmem %s2163_s7, %s1478_s19  ;;  %s1970_s15 = scalar_lea.vmem [#allocation3], %s1474_s12 }
  0x35   : > { %471 = sbr.rel (%p1483_p12) target bundleno = 67 (0x43), region = 93 }
  0x3a   : > { %vm472_vm0 = vcmask 261120   ;;  %v1825_v16 = vmov 0.0  }
  0x3b   : > { %473 = vst.msk [vmem:[#allocation2] sm:$0xff] %vm472_vm0, %v1825_v16  ;;  %474 = vst.msk [vmem:[#allocation2 + $0x8] sm:$0xff] %vm472_vm0, %v1825_v16 }
  0x3c   : > { %475 = vst.msk [vmem:[#allocation2 + $0x10] sm:$0xff] %vm472_vm0, %v1825_v16  ;;  %476 = vst.msk [vmem:[#allocation2 + $0x18] sm:$0xff] %vm472_vm0, %v1825_v16 }
  0x3d   : > { %477 = vst.msk [vmem:[#allocation2 + $0x20] sm:$0xff] %vm472_vm0, %v1825_v16  ;;  %478 = vst.msk [vmem:[#allocation2 + $0x28] sm:$0xff] %vm472_vm0, %v1825_v16 }
  0x3e   : > { %479 = vst.msk [vmem:[#allocation2 + $0x30] sm:$0xff] %vm472_vm0, %v1825_v16  ;;  %480 = vst.msk [vmem:[#allocation2 + $0x38] sm:$0xff] %vm472_vm0, %v1825_v16 }
  0x3f   : > { %481 = vst.msk [vmem:[#allocation2 + $0x40] sm:$0xff] %vm472_vm0, %v1825_v16  ;;  %482 = vst.msk [vmem:[#allocation2 + $0x48] sm:$0xff] %vm472_vm0, %v1825_v16 }
  0x40   : > { %483 = vst.msk [vmem:[#allocation2 + $0x50] sm:$0xff] %vm472_vm0, %v1825_v16  ;;  %484 = vst.msk [vmem:[#allocation2 + $0x58] sm:$0xff] %vm472_vm0, %v1825_v16 }
  0x41   : > { %485 = vst.msk [vmem:[#allocation2 + $0x60] sm:$0xff] %vm472_vm0, %v1825_v16  ;;  %486 = vst.msk [vmem:[#allocation2 + $0x68] sm:$0xff] %vm472_vm0, %v1825_v16 }
  0x42   : > { %487 = vst.msk [vmem:[#allocation2 + $0x70] sm:$0xff] %vm472_vm0, %v1825_v16  ;;  %488 = vst.msk [vmem:[#allocation2 + $0x78] sm:$0xff] %vm472_vm0, %v1825_v16 }
  0x43 PF: > { %v1747_v17 = vld [vmem:[%s1953_s18 + $0x38] sm:$0xff]   ;;  %v1748_v18 = vld [vmem:[%s1953_s18 + $0x30] sm:$0xff]   ;;  %v1749_v19 = vld [vmem:[%s1953_s18 + $0x28] sm:$0xff]   ;;  %vm762_vm1 = vcmask 261120   ;;  %p1500_p13 = scmp.ne.s32.totalorder %s1807_s26, 2 }
  0x44   : > { %1600 = vmatprep.subr.bf16.mxu0 %v1747_v17  ;;  %1672 = vmatprep.subr.bf16.mxu1 %v1747_v17  ;;  %v1750_v20 = vld [vmem:[%s1953_s18 + $0x20] sm:$0xff]   ;;  %v497_v23 = vld [vmem:[%s1970_s15 + $0x10] sm:$0x3]  ;;  %v498_v26 = vld [vmem:[%s1970_s15 + $0x12] sm:$0x3] }
  0x45   : > { %1601 = vmatpush3.bf16.msra.mxu0 %v1747_v17  ;;  %1680 = vmatpush3.bf16.msra.mxu1 %v1747_v17  ;;  %v489_v21 = vld [vmem:[%s1970_s15] sm:$0x3]  ;;  %v490_v22 = vld [vmem:[%s1970_s15 + $0x2] sm:$0x3]  ;;  %v513_v27 = vunpack.c.l.s8.bf16 %v497_v23  ;;  %v514_v28 = vunpack.c.l.s8.bf16 %v498_v26  ;;  %v1751_v30 = vld [vmem:[%s1953_s18 + $0x18] sm:$0xff]  }
  0x46   : > { %1602 = vmatprep.subr.bf16.mxu0 %v1748_v18  ;;  %1673 = vmatprep.subr.bf16.mxu1 %v1748_v18  ;;  %v505_v24 = vunpack.c.l.s8.bf16 %v489_v21  ;;  %v506_v25 = vunpack.c.l.s8.bf16 %v490_v22  ;;  %v1752_v32 = vld [vmem:[%s1953_s18 + $0x10] sm:$0xff]   ;;  %v1753_v33 = vld [vmem:[%s1953_s18 + $0x8] sm:$0xff]   ;;  %v1754_v34 = vld [vmem:[%s1953_s18] sm:$0xff]  }
  0x47   : > { %v1488_v31 = vcombine.low %v513_v27, %v514_v28  ;;  %v491_v35 = vld [vmem:[%s1970_s15 + $0x4] sm:$0x3]  ;;  %v492_v36 = vld [vmem:[%s1970_s15 + $0x6] sm:$0x3]  ;;  %v499_v37 = vld [vmem:[%s1970_s15 + $0x14] sm:$0x3] }
  0x48   : > { %v1484_v29 = vcombine.low %v505_v24, %v506_v25  ;;  %v500_v38 = vld [vmem:[%s1970_s15 + $0x16] sm:$0x3]  ;;  %v493_v39 = vld [vmem:[%s1970_s15 + $0x8] sm:$0x3]  ;;  %v494_v40 = vld [vmem:[%s1970_s15 + $0xa] sm:$0x3]  ;;  %v507_v43 = vunpack.c.l.s8.bf16 %v491_v35  ;;  %v508_v44 = vunpack.c.l.s8.bf16 %v492_v36  ;;  %v515_v45 = vunpack.c.l.s8.bf16 %v499_v37 }
  0x49   : > { %1603 = vmatpush3.bf16.msra.mxu0 %v1748_v18  ;;  %1681 = vmatpush3.bf16.msra.mxu1 %v1748_v18  ;;  %v501_v41 = vld [vmem:[%s1970_s15 + $0x18] sm:$0x3]  ;;  %v502_v42 = vld [vmem:[%s1970_s15 + $0x1a] sm:$0x3]  ;;  %v516_v46 = vunpack.c.l.s8.bf16 %v500_v38  ;;  %v509_v47 = vunpack.c.l.s8.bf16 %v493_v39  ;;  %v510_v48 = vunpack.c.l.s8.bf16 %v494_v40  ;;  %v495_v53 = vld [vmem:[%s1970_s15 + $0xc] sm:$0x3] }
  0x4a   : > { %1604 = vmatprep.subr.bf16.mxu0 %v1749_v19  ;;  %1674 = vmatprep.subr.bf16.mxu1 %v1749_v19  ;;  %v517_v49 = vunpack.c.l.s8.bf16 %v501_v41  ;;  %v518_v50 = vunpack.c.l.s8.bf16 %v502_v42  ;;  %v1485_v51 = vcombine.low %v507_v43, %v508_v44  ;;  %v496_v56 = vld [vmem:[%s1970_s15 + $0xe] sm:$0x3]  ;;  %v503_v57 = vld [vmem:[%s1970_s15 + $0x1c] sm:$0x3]  ;;  %v504_v58 = vld [vmem:[%s1970_s15 + $0x1e] sm:$0x3]  ;;  %v511_v59 = vunpack.c.l.s8.bf16 %v495_v53 }
  0x4b   : > { %1616 = vmatprep.mubr.bf16.mxu0 %v1484_v29  ;;  %1624 = vmatprep.mubr.bf16.mxu1 %v1488_v31  ;;  %v1489_v52 = vcombine.low %v515_v45, %v516_v46  ;;  %v1486_v54 = vcombine.low %v509_v47, %v510_v48  ;;  %v512_v60 = vunpack.c.l.s8.bf16 %v496_v56  ;;  %v519_v61 = vunpack.c.l.s8.bf16 %v503_v57  ;;  %v523_v1 = vld [vmem:[#allocation2 + $0x10] sm:$0xff]  ;;  %v521_v5 = vld [vmem:[#allocation2] sm:$0xff]  ;;  %v524_v11 = vld [vmem:[#allocation2 + $0x18] sm:$0xff] }
  0x4c   : > { %v1490_v55 = vcombine.low %v517_v49, %v518_v50  ;;  %v520_v62 = vunpack.c.l.s8.bf16 %v504_v58  ;;  %v531_v2 = vld [vmem:[#allocation2 + $0x50] sm:$0xff]  ;;  %v529_v6 = vld [vmem:[#allocation2 + $0x40] sm:$0xff]  ;;  %v532_v12 = vld [vmem:[#allocation2 + $0x58] sm:$0xff] }
  0x4d   : > { %1605 = vmatpush3.bf16.msra.mxu0 %v1749_v19  ;;  %1682 = vmatpush3.bf16.msra.mxu1 %v1749_v19  ;;  %v1487_v63 = vcombine.low %v511_v59, %v512_v60  ;;  %v522_v17 = vld [vmem:[#allocation2 + $0x8] sm:$0xff]  ;;  %v527_v23 = vld [vmem:[#allocation2 + $0x30] sm:$0xff]  ;;  %v525_v29 = vld [vmem:[#allocation2 + $0x20] sm:$0xff] }
  0x4e   : > { %1606 = vmatprep.subr.bf16.mxu0 %v1750_v20  ;;  %1675 = vmatprep.subr.bf16.mxu1 %v1750_v20  ;;  %v1491_v0 = vcombine.low %v519_v61, %v520_v62  ;;  %v530_v18 = vld [vmem:[#allocation2 + $0x48] sm:$0xff]  ;;  %v535_v24 = vld [vmem:[#allocation2 + $0x70] sm:$0xff]  ;;  %v528_v35 = vld [vmem:[#allocation2 + $0x38] sm:$0xff] }
  0x4f   : > { %v536_v36 = vld [vmem:[#allocation2 + $0x78] sm:$0xff]  ;;  %v526_v41 = vld [vmem:[#allocation2 + $0x28] sm:$0xff] }
  0x50   : > { %v534_v42 = vld [vmem:[#allocation2 + $0x68] sm:$0xff] }
  0x51   : > { %1607 = vmatpush3.bf16.msra.mxu0 %v1750_v20  ;;  %1683 = vmatpush3.bf16.msra.mxu1 %v1750_v20 }
  0x52   : > { %1608 = vmatprep.subr.bf16.mxu0 %v1751_v30  ;;  %1676 = vmatprep.subr.bf16.mxu1 %v1751_v30 }
  0x55   : > { %1609 = vmatpush3.bf16.msra.mxu0 %v1751_v30  ;;  %1684 = vmatpush3.bf16.msra.mxu1 %v1751_v30  ;;  %v533_v30 = vld [vmem:[#allocation2 + $0x60] sm:$0xff] }
  0x56   : > { %1610 = vmatprep.subr.bf16.mxu0 %v1752_v32  ;;  %1677 = vmatprep.subr.bf16.mxu1 %v1752_v32 }
  0x59   : > { %1611 = vmatpush3.bf16.msra.mxu0 %v1752_v32  ;;  %1685 = vmatpush3.bf16.msra.mxu1 %v1752_v32 }
  0x5a   : > { %1612 = vmatprep.subr.bf16.mxu0 %v1753_v33  ;;  %1678 = vmatprep.subr.bf16.mxu1 %v1753_v33 }
  0x5d   : > { %1613 = vmatpush3.bf16.msra.mxu0 %v1753_v33  ;;  %1686 = vmatpush3.bf16.msra.mxu1 %v1753_v33 }
  0x5e   : > { %1614 = vmatprep.subr.bf16.mxu0 %v1754_v34  ;;  %1679 = vmatprep.subr.bf16.mxu1 %v1754_v34 }
  0x61   : > { %1615 = vmatpush3.bf16.msra.mxu0 %v1754_v34  ;;  %1687 = vmatpush3.bf16.msra.mxu1 %v1754_v34 }
  0x64   : > { %1617 = vmatmul.mubr.bf16.vlgmr.msra.gmra.mxu0 %v1485_v51  ;;  %1625 = vmatmul.mubr.bf16.vlgmr.msra.gmra.mxu1 %v1489_v52 }
  0x65   : > { %1620 = vmatprep.mubr.bf16.mxu0 %v1486_v54  ;;  %1628 = vmatprep.mubr.bf16.mxu1 %v1490_v55 }
  0x6c   : > { %1621 = vmatmul.mubr.bf16.gmra.mxu0 %v1487_v63  ;;  %1629 = vmatmul.mubr.bf16.gmra.mxu1 %v1491_v0 }
 0x124   : > { %v1618_v3 = vpop.f32.mrf.mxu0  ;;  %v1626_v4 = vpop.f32.mrf.mxu1 }
 0x125   : > { %v748_v7 = vadd.f32 %v1618_v3, %v523_v1  ;;  %v756_v8 = vadd.f32 %v1626_v4, %v531_v2 }
 0x126   : > { %v683_v9 = vpop.f32.mrf.mxu0  ;;  %v715_v10 = vpop.f32.mrf.mxu1 }
 0x127   : > { %765 = vst.msk [vmem:[#allocation2 + $0x10] sm:$0xff] %vm762_vm1, %v748_v7  ;;  %773 = vst.msk [vmem:[#allocation2 + $0x50] sm:$0xff] %vm762_vm1, %v756_v8  ;;  %v746_v13 = vadd.f32 %v683_v9, %v521_v5  ;;  %v754_v14 = vadd.f32 %v715_v10, %v529_v6 }
 0x128   : > { %v1619_v15 = vpop.f32.mrf.mxu0  ;;  %v1627_v16 = vpop.f32.mrf.mxu1 }
 0x129   : > { %763 = vst.msk [vmem:[#allocation2] sm:$0xff] %vm762_vm1, %v746_v13  ;;  %771 = vst.msk [vmem:[#allocation2 + $0x40] sm:$0xff] %vm762_vm1, %v754_v14  ;;  %v749_v19 = vadd.f32 %v1619_v15, %v524_v11  ;;  %v757_v20 = vadd.f32 %v1627_v16, %v532_v12 }
 0x12a   : > { %v686_v21 = vpop.f32.mrf.mxu0  ;;  %v718_v22 = vpop.f32.mrf.mxu1 }
 0x12b   : > { %766 = vst.msk [vmem:[#allocation2 + $0x18] sm:$0xff] %vm762_vm1, %v749_v19  ;;  %774 = vst.msk [vmem:[#allocation2 + $0x58] sm:$0xff] %vm762_vm1, %v757_v20  ;;  %v747_v25 = vadd.f32 %v686_v21, %v522_v17  ;;  %v755_v26 = vadd.f32 %v718_v22, %v530_v18 }
 0x12c   : > { %v1622_v27 = vpop.f32.mrf.mxu0  ;;  %v1630_v28 = vpop.f32.mrf.mxu1 }
 0x12d   : > { %764 = vst.msk [vmem:[#allocation2 + $0x8] sm:$0xff] %vm762_vm1, %v747_v25  ;;  %772 = vst.msk [vmem:[#allocation2 + $0x48] sm:$0xff] %vm762_vm1, %v755_v26  ;;  %v752_v31 = vadd.f32 %v1622_v27, %v527_v23  ;;  %v760_v32 = vadd.f32 %v1630_v28, %v535_v24 }
 0x12e   : > { %v699_v33 = vpop.f32.mrf.mxu0  ;;  %v731_v34 = vpop.f32.mrf.mxu1 }
 0x12f   : > { %769 = vst.msk [vmem:[#allocation2 + $0x30] sm:$0xff] %vm762_vm1, %v752_v31  ;;  %777 = vst.msk [vmem:[#allocation2 + $0x70] sm:$0xff] %vm762_vm1, %v760_v32  ;;  %v750_v37 = vadd.f32 %v699_v33, %v525_v29  ;;  %v758_v38 = vadd.f32 %v731_v34, %v533_v30 }
 0x130   : > { %v1623_v39 = vpop.f32.mrf.mxu0  ;;  %v1631_v40 = vpop.f32.mrf.mxu1 }
 0x131   : > { %767 = vst.msk [vmem:[#allocation2 + $0x20] sm:$0xff] %vm762_vm1, %v750_v37  ;;  %775 = vst.msk [vmem:[#allocation2 + $0x60] sm:$0xff] %vm762_vm1, %v758_v38  ;;  %v753_v43 = vadd.f32 %v1623_v39, %v528_v35  ;;  %v761_v44 = vadd.f32 %v1631_v40, %v536_v36  ;;  %782 = sbr.rel (%p1500_p13) target bundleno = 675 (0x2a3), region = 97 }
 0x132   : > { %v702_v45 = vpop.f32.mrf.mxu0  ;;  %v734_v46 = vpop.f32.mrf.mxu1 }
 0x133   : > { %770 = vst.msk [vmem:[#allocation2 + $0x38] sm:$0xff] %vm762_vm1, %v753_v43  ;;  %778 = vst.msk [vmem:[#allocation2 + $0x78] sm:$0xff] %vm762_vm1, %v761_v44  ;;  %v751_v47 = vadd.f32 %v702_v45, %v526_v41  ;;  %v759_v48 = vadd.f32 %v734_v46, %v534_v42 }
 0x135   : > { %768 = vst.msk [vmem:[#allocation2 + $0x28] sm:$0xff] %vm762_vm1, %v751_v47  ;;  %776 = vst.msk [vmem:[#allocation2 + $0x68] sm:$0xff] %vm762_vm1, %v759_v48 }
 0x136   : > { %v801_v49 = vld [vmem:[%s1963_s27 + $0x10] sm:$0xff]  ;;  %v799_v50 = vld [vmem:[%s1963_s27] sm:$0xff]  ;;  %v1826_v51 = vmov 0   ;;  %v802_v52 = vld [vmem:[%s1963_s27 + $0x18] sm:$0xff]  ;;  %vm1336_vm2 = vcmask 257024  }
 0x137   : > { %1756 = vset.pattern.permute.xlu1 %v1826_v51  ;;  %1755 = vset.pattern.permute.xlu0 %v1826_v51  ;;  %v800_v53 = vld [vmem:[%s1963_s27 + $0x8] sm:$0xff]  ;;  %v803_v56 = vld [vmem:[%s1963_s27 + $0x20] sm:$0xff]  ;;  %v806_v60 = vld [vmem:[%s1963_s27 + $0x38] sm:$0xff] }
 0x138   : > { %827 = vperm.xlu1 %1756, %v801_v49   ;;  %817 = vperm.xlu0 %1755, %v799_v50   ;;  %v1757_v54 = vld [vmem:[%s2160_s4 + $0x8] sm:$0xff]   ;;  %v1758_v57 = vld [vmem:[%s2160_s4] sm:$0xff]   ;;  %v805_v61 = vld [vmem:[%s1963_s27 + $0x30] sm:$0xff] }
 0x139   : > { %v804_v55 = vld [vmem:[%s1963_s27 + $0x28] sm:$0xff]  ;;  %1652 = vmatprep.subr.bf16.mxu1 %v1757_v54  ;;  %v1760_v59 = vld [vmem:[%s1958_s23] sm:$0xff]   ;;  %v1763_v0 = vld [vmem:[%s1958_s23 + $0x10] sm:$0xff]  }
 0x13a   : > { %v1759_v58 = vld [vmem:[%s2161_s5 + $0x8] sm:$0xff]   ;;  %1653 = vmatpush3.bf16.msra.mxu1 %v1757_v54  ;;  %1656 = vmatprep.mubr.msk.bf16.mxu1 %vm762_vm1, %v1760_v59  ;;  %v1762_v63 = vld [vmem:[%s2161_s5] sm:$0xff]   ;;  %v810_v3 = vld [vmem:[%s1963_s27 + $0x58] sm:$0xff] }
 0x13b   : > { %1654 = vmatprep.subr.bf16.mxu1 %v1758_v57  ;;  %1632 = vmatprep.subr.bf16.mxu0 %v1759_v58  ;;  %v1761_v62 = vld [vmem:[%s1958_s23 + $0x8] sm:$0xff]   ;;  %v807_v2 = vld [vmem:[%s1963_s27 + $0x40] sm:$0xff]  ;;  %v809_v4 = vld [vmem:[%s1963_s27 + $0x50] sm:$0xff] }
 0x13c   : > { %832 = vperm.xlu1 %1756, %v802_v52   ;;  %822 = vperm.xlu0 %1755, %v800_v53   ;;  %v808_v1 = vld [vmem:[%s1963_s27 + $0x48] sm:$0xff]  ;;  %v1764_v5 = vld [vmem:[%s1958_s23 + $0x18] sm:$0xff]   ;;  %v1765_v6 = vld [vmem:[%s1958_s23 + $0x20] sm:$0xff]  }
 0x13d   : > { %1633 = vmatpush3.bf16.msra.mxu0 %v1759_v58  ;;  %v812_v7 = vld [vmem:[%s1963_s27 + $0x68] sm:$0xff]  ;;  %v811_v8 = vld [vmem:[%s1963_s27 + $0x60] sm:$0xff]  ;;  %v814_v9 = vld [vmem:[%s1963_s27 + $0x78] sm:$0xff] }
 0x13e   : > { %1655 = vmatpush3.bf16.msra.mxu1 %v1758_v57  ;;  %1634 = vmatprep.subr.bf16.mxu0 %v1762_v63  ;;  %v813_v10 = vld [vmem:[%s1963_s27 + $0x70] sm:$0xff]  ;;  %v1766_v11 = vld [vmem:[%s1958_s23 + $0x28] sm:$0xff]   ;;  %v1768_v13 = vld [vmem:[%s1958_s23 + $0x38] sm:$0xff]  }
 0x13f   : > { %v1767_v12 = vld [vmem:[%s1958_s23 + $0x30] sm:$0xff]   ;;  %v783_v17 = vld [vmem:[#allocation2] sm:$0xff]  ;;  %v786_v18 = vld [vmem:[#allocation2 + $0x18] sm:$0xff] }
 0x140   : > { %842 = vperm.xlu1 %1756, %v804_v55   ;;  %837 = vperm.xlu0 %1755, %v803_v56   ;;  %v785_v16 = vld [vmem:[#allocation2 + $0x10] sm:$0xff]  ;;  %v784_v19 = vld [vmem:[#allocation2 + $0x8] sm:$0xff]  ;;  %v787_v27 = vld [vmem:[#allocation2 + $0x20] sm:$0xff] }
 0x141   : > { %1657 = vmatmul.mubr.msk.bf16.vlgmr.msra.gmra.mxu1 %vm762_vm1, %v1761_v62  ;;  %1635 = vmatpush3.bf16.msra.mxu0 %v1762_v63  ;;  %v788_v26 = vld [vmem:[#allocation2 + $0x28] sm:$0xff]  ;;  %v790_v34 = vld [vmem:[#allocation2 + $0x38] sm:$0xff]  ;;  %v789_v35 = vld [vmem:[#allocation2 + $0x30] sm:$0xff] }
 0x142   : > { %1660 = vmatprep.mubr.msk.bf16.mxu1 %vm762_vm1, %v1763_v0  ;;  %v792_v41 = vld [vmem:[#allocation2 + $0x48] sm:$0xff]  ;;  %v791_v42 = vld [vmem:[#allocation2 + $0x40] sm:$0xff]  ;;  %v794_v48 = vld [vmem:[#allocation2 + $0x58] sm:$0xff] }
 0x143   : > { %v793_v49 = vld [vmem:[#allocation2 + $0x50] sm:$0xff]  ;;  %v796_v55 = vld [vmem:[#allocation2 + $0x68] sm:$0xff]  ;;  %v795_v56 = vld [vmem:[#allocation2 + $0x60] sm:$0xff] }
 0x144   : > { %852 = vperm.xlu1 %1756, %v806_v60   ;;  %847 = vperm.xlu0 %1755, %v805_v61   ;;  %v798_v62 = vld [vmem:[#allocation2 + $0x78] sm:$0xff]  ;;  %v797_v63 = vld [vmem:[#allocation2 + $0x70] sm:$0xff] }
 0x148   : > { %862 = vperm.xlu1 %1756, %v808_v1   ;;  %857 = vperm.xlu0 %1755, %v807_v2  }
 0x149   : > { %1661 = vmatmul.mubr.msk.bf16.gmra.mxu1 %vm762_vm1, %v1764_v5 }
 0x14a   : > { %1664 = vmatprep.mubr.msk.bf16.mxu1 %vm762_vm1, %v1765_v6 }
 0x14c   : > { %872 = vperm.xlu1 %1756, %v810_v3   ;;  %867 = vperm.xlu0 %1755, %v809_v4  }
 0x150   : > { %882 = vperm.xlu1 %1756, %v812_v7   ;;  %877 = vperm.xlu0 %1755, %v811_v8  }
 0x151   : > { %1665 = vmatmul.mubr.msk.bf16.gmra.mxu1 %vm762_vm1, %v1766_v11 }
 0x152   : > { %1668 = vmatprep.mubr.msk.bf16.mxu1 %vm762_vm1, %v1767_v12 }
 0x154   : > { %892 = vperm.xlu1 %1756, %v814_v9   ;;  %887 = vperm.xlu0 %1755, %v813_v10  }
 0x159   : > { %1669 = vmatmul.mubr.msk.bf16.gmra.mxu1 %vm762_vm1, %v1768_v13 }
 0x1b3   : > { %v828_v14 = vpop.permute.xlu1 %827  ;;  %v818_v15 = vpop.permute.xlu0 %817 }
 0x1b4   : > { %v897_v22 = vmul.f32 %v828_v14, %v785_v16  ;;  %v895_v23 = vmul.f32 %v818_v15, %v783_v17  ;;  %v2085_v15 = vld [vmem:[%s2162_s6] ss:$0 sm:$0xff] }
 0x1b7   : > { %v833_v20 = vpop.permute.xlu1 %832  ;;  %v823_v21 = vpop.permute.xlu0 %822 }
 0x1b8   : > { %v898_v24 = vmul.f32 %v833_v20, %v786_v18  ;;  %v896_v25 = vmul.f32 %v823_v21, %v784_v19 }
 0x1ba   : > { %v912_v28 = vpack.c.bf16 %v898_v24, %v897_v22  ;;  %v911_v29 = vpack.c.bf16 %v896_v25, %v895_v23 }
 0x1bb   : > { %v843_v30 = vpop.permute.xlu1 %842  ;;  %v838_v31 = vpop.permute.xlu0 %837 }
 0x1bc   : > { %v900_v32 = vmul.f32 %v843_v30, %v788_v26  ;;  %v899_v33 = vmul.f32 %v838_v31, %v787_v27  ;;  %1636 = vmatprep.mubr.msk.bf16.mxu0 %vm762_vm1, %v911_v29 }
 0x1bd   : > { %1637 = vmatmul.mubr.msk.bf16.vlgmr.msra.gmra.mxu0 %vm762_vm1, %v912_v28 }
 0x1be   : > { %v913_v36 = vpack.c.bf16 %v900_v32, %v899_v33 }
 0x1bf   : > { %v853_v37 = vpop.permute.xlu1 %852  ;;  %v848_v38 = vpop.permute.xlu0 %847 }
 0x1c0   : > { %v902_v39 = vmul.f32 %v853_v37, %v790_v34  ;;  %v901_v40 = vmul.f32 %v848_v38, %v789_v35  ;;  %1640 = vmatprep.mubr.msk.bf16.mxu0 %vm762_vm1, %v913_v36 }
 0x1c2   : > { %v914_v43 = vpack.c.bf16 %v902_v39, %v901_v40 }
 0x1c3   : > { %v863_v44 = vpop.permute.xlu1 %862  ;;  %v858_v45 = vpop.permute.xlu0 %857 }
 0x1c4   : > { %v904_v46 = vmul.f32 %v863_v44, %v792_v41  ;;  %v903_v47 = vmul.f32 %v858_v45, %v791_v42 }
 0x1c5   : > { %1641 = vmatmul.mubr.msk.bf16.gmra.mxu0 %vm762_vm1, %v914_v43 }
 0x1c6   : > { %v915_v50 = vpack.c.bf16 %v904_v46, %v903_v47 }
 0x1c7   : > { %v873_v51 = vpop.permute.xlu1 %872  ;;  %v868_v52 = vpop.permute.xlu0 %867 }
 0x1c8   : > { %v906_v53 = vmul.f32 %v873_v51, %v794_v48  ;;  %v905_v54 = vmul.f32 %v868_v52, %v793_v49  ;;  %1644 = vmatprep.mubr.msk.bf16.mxu0 %vm762_vm1, %v915_v50 }
 0x1ca   : > { %v916_v57 = vpack.c.bf16 %v906_v53, %v905_v54 }
 0x1cb   : > { %v883_v58 = vpop.permute.xlu1 %882  ;;  %v878_v59 = vpop.permute.xlu0 %877 }
 0x1cc   : > { %v908_v60 = vmul.f32 %v883_v58, %v796_v55  ;;  %v907_v61 = vmul.f32 %v878_v59, %v795_v56 }
 0x1cd   : > { %1645 = vmatmul.mubr.msk.bf16.gmra.mxu0 %vm762_vm1, %v916_v57 }
 0x1ce   : > { %v917_v0 = vpack.c.bf16 %v908_v60, %v907_v61 }
 0x1cf   : > { %v893_v1 = vpop.permute.xlu1 %892  ;;  %v888_v2 = vpop.permute.xlu0 %887 }
 0x1d0   : > { %v910_v3 = vmul.f32 %v893_v1, %v798_v62  ;;  %v909_v4 = vmul.f32 %v888_v2, %v797_v63  ;;  %1648 = vmatprep.mubr.msk.bf16.mxu0 %vm762_vm1, %v917_v0 }
 0x1d2   : > { %v918_v5 = vpack.c.bf16 %v910_v3, %v909_v4 }
 0x1d5   : > { %1649 = vmatmul.mubr.msk.bf16.gmra.mxu0 %vm762_vm1, %v918_v5 }
 0x201   : > { %v1658_v6 = vpop.f32.mrf.mxu1 }
 0x203   : > { %v1186_v7 = vpop.f32.mrf.mxu1 }
 0x205   : > { %v1659_v8 = vpop.f32.mrf.mxu1 }
 0x207   : > { %v1189_v9 = vpop.f32.mrf.mxu1 }
 0x209   : > { %v1662_v10 = vpop.f32.mrf.mxu1 }
 0x20b   : > { %v1202_v11 = vpop.f32.mrf.mxu1 }
 0x20d   : > { %v1663_v12 = vpop.f32.mrf.mxu1 }
 0x20f   : > { %v1205_v13 = vpop.f32.mrf.mxu1 }
 0x211   : > { %v1666_v18 = vpop.f32.mrf.mxu1 }
 0x213   : > { %v1218_v26 = vpop.f32.mrf.mxu1 }
 0x215   : > { %v1667_v35 = vpop.f32.mrf.mxu1 }
 0x217   : > { %v1221_v44 = vpop.f32.mrf.mxu1 }
 0x219   : > { %v1670_v53 = vpop.f32.mrf.mxu1 }
 0x21b   : > { %v1234_v61 = vpop.f32.mrf.mxu1 }
 0x27d   : > { %v1638_v14 = vpop.f32.mrf.mxu0 }
 0x27e   : > { %v1195_v16 = vadd.f32 %v1658_v6, %v1638_v14  ;;  %v1671_v6 = vpop.f32.mrf.mxu1 }
 0x27f   : > { %v1013_v17 = vpop.f32.mrf.mxu0 }
 0x280   : > { %v1258_v19 = vadd.f32 %v2085_v15, %v1195_v16  ;;  %v1187_v20 = vadd.f32 %v1186_v7, %v1013_v17  ;;  %v1237_v16 = vpop.f32.mrf.mxu1 }
 0x281   : > { %v1639_v21 = vpop.f32.mrf.mxu0 }
 0x282   : > { %v1550_v22 = vpack.c.bf16 %v1258_v19, %v1258_v19  ;;  %v1256_v23 = vadd.f32 %v2085_v15, %v1187_v20  ;;  %v1198_v24 = vadd.f32 %v1659_v8, %v1639_v21 }
 0x283   : > { %v1016_v25 = vpop.f32.mrf.mxu0 }
 0x284   : > { %1339 = vst.msk [vmem:[%s1968_s9 + $0x8] sm:$0xf] %vm1336_vm2, %v1550_v22  ;;  %v1548_v27 = vpack.c.bf16 %v1256_v23, %v1256_v23  ;;  %v1259_v28 = vadd.f32 %v2085_v15, %v1198_v24  ;;  %v1190_v29 = vadd.f32 %v1189_v9, %v1016_v25 }
 0x285   : > { %v1642_v30 = vpop.f32.mrf.mxu0 }
 0x286   : > { %1337 = vst.msk [vmem:[%s1968_s9] sm:$0xf] %vm1336_vm2, %v1548_v27  ;;  %v1551_v31 = vpack.c.bf16 %v1259_v28, %v1259_v28  ;;  %v1257_v32 = vadd.f32 %v2085_v15, %v1190_v29  ;;  %v1211_v33 = vadd.f32 %v1662_v10, %v1642_v30 }
 0x287   : > { %v1029_v34 = vpop.f32.mrf.mxu0 }
 0x288   : > { %1340 = vst.msk [vmem:[%s1968_s9 + $0xc] sm:$0xf] %vm1336_vm2, %v1551_v31  ;;  %v1549_v36 = vpack.c.bf16 %v1257_v32, %v1257_v32  ;;  %v1262_v37 = vadd.f32 %v2085_v15, %v1211_v33  ;;  %v1203_v38 = vadd.f32 %v1202_v11, %v1029_v34 }
 0x289   : > { %v1643_v39 = vpop.f32.mrf.mxu0 }
 0x28a   : > { %1338 = vst.msk [vmem:[%s1968_s9 + $0x4] sm:$0xf] %vm1336_vm2, %v1549_v36  ;;  %v1554_v40 = vpack.c.bf16 %v1262_v37, %v1262_v37  ;;  %v1260_v41 = vadd.f32 %v2085_v15, %v1203_v38  ;;  %v1214_v42 = vadd.f32 %v1663_v12, %v1643_v39 }
 0x28b   : > { %v1032_v43 = vpop.f32.mrf.mxu0 }
 0x28c   : > { %1343 = vst.msk [vmem:[%s1968_s9 + $0x18] sm:$0xf] %vm1336_vm2, %v1554_v40  ;;  %v1552_v45 = vpack.c.bf16 %v1260_v41, %v1260_v41  ;;  %v1263_v46 = vadd.f32 %v2085_v15, %v1214_v42  ;;  %v1206_v47 = vadd.f32 %v1205_v13, %v1032_v43 }
 0x28d   : > { %v1646_v48 = vpop.f32.mrf.mxu0 }
 0x28e   : > { %1341 = vst.msk [vmem:[%s1968_s9 + $0x10] sm:$0xf] %vm1336_vm2, %v1552_v45  ;;  %v1555_v49 = vpack.c.bf16 %v1263_v46, %v1263_v46  ;;  %v1261_v50 = vadd.f32 %v2085_v15, %v1206_v47  ;;  %v1227_v51 = vadd.f32 %v1666_v18, %v1646_v48 }
 0x28f   : > { %v1045_v52 = vpop.f32.mrf.mxu0 }
 0x290   : > { %1344 = vst.msk [vmem:[%s1968_s9 + $0x1c] sm:$0xf] %vm1336_vm2, %v1555_v49  ;;  %v1553_v54 = vpack.c.bf16 %v1261_v50, %v1261_v50  ;;  %v1266_v55 = vadd.f32 %v2085_v15, %v1227_v51  ;;  %v1219_v56 = vadd.f32 %v1218_v26, %v1045_v52 }
 0x291   : > { %v1647_v57 = vpop.f32.mrf.mxu0 }
 0x292   : > { %1342 = vst.msk [vmem:[%s1968_s9 + $0x14] sm:$0xf] %vm1336_vm2, %v1553_v54  ;;  %v1558_v58 = vpack.c.bf16 %v1266_v55, %v1266_v55  ;;  %v1264_v59 = vadd.f32 %v2085_v15, %v1219_v56  ;;  %v1230_v60 = vadd.f32 %v1667_v35, %v1647_v57 }
 0x293   : > { %v1048_v62 = vpop.f32.mrf.mxu0 }
 0x294   : > { %1347 = vst.msk [vmem:[%s1968_s9 + $0x28] sm:$0xf] %vm1336_vm2, %v1558_v58  ;;  %v1556_v63 = vpack.c.bf16 %v1264_v59, %v1264_v59  ;;  %v1267_v0 = vadd.f32 %v2085_v15, %v1230_v60  ;;  %v1222_v1 = vadd.f32 %v1221_v44, %v1048_v62 }
 0x295   : > { %v1650_v2 = vpop.f32.mrf.mxu0 }
 0x296   : > { %1345 = vst.msk [vmem:[%s1968_s9 + $0x20] sm:$0xf] %vm1336_vm2, %v1556_v63  ;;  %v1559_v3 = vpack.c.bf16 %v1267_v0, %v1267_v0  ;;  %v1265_v4 = vadd.f32 %v2085_v15, %v1222_v1  ;;  %v1243_v5 = vadd.f32 %v1670_v53, %v1650_v2 }
 0x297   : > { %v1061_v7 = vpop.f32.mrf.mxu0 }
 0x298   : > { %1348 = vst.msk [vmem:[%s1968_s9 + $0x2c] sm:$0xf] %vm1336_vm2, %v1559_v3  ;;  %v1557_v8 = vpack.c.bf16 %v1265_v4, %v1265_v4  ;;  %v1270_v9 = vadd.f32 %v2085_v15, %v1243_v5  ;;  %v1235_v10 = vadd.f32 %v1234_v61, %v1061_v7 }
 0x299   : > { %v1651_v11 = vpop.f32.mrf.mxu0 }
 0x29a   : > { %1346 = vst.msk [vmem:[%s1968_s9 + $0x24] sm:$0xf] %vm1336_vm2, %v1557_v8  ;;  %v1562_v12 = vpack.c.bf16 %v1270_v9, %v1270_v9  ;;  %v1268_v13 = vadd.f32 %v2085_v15, %v1235_v10  ;;  %v1246_v14 = vadd.f32 %v1671_v6, %v1651_v11 }
 0x29b   : > { %v1064_v17 = vpop.f32.mrf.mxu0 }
 0x29c   : > { %1351 = vst.msk [vmem:[%s1968_s9 + $0x38] sm:$0xf] %vm1336_vm2, %v1562_v12  ;;  %v1560_v18 = vpack.c.bf16 %v1268_v13, %v1268_v13  ;;  %v1271_v19 = vadd.f32 %v2085_v15, %v1246_v14  ;;  %v1238_v20 = vadd.f32 %v1237_v16, %v1064_v17 }
 0x29e   : > { %1349 = vst.msk [vmem:[%s1968_s9 + $0x30] sm:$0xf] %vm1336_vm2, %v1560_v18  ;;  %v1563_v21 = vpack.c.bf16 %v1271_v19, %v1271_v19  ;;  %v1269_v22 = vadd.f32 %v2085_v15, %v1238_v20 }
 0x2a0   : > { %1352 = vst.msk [vmem:[%s1968_s9 + $0x3c] sm:$0xf] %vm1336_vm2, %v1563_v21  ;;  %v1561_v23 = vpack.c.bf16 %v1269_v22, %v1269_v22 }
 0x2a2   : > { %1350 = vst.msk [vmem:[%s1968_s9 + $0x34] sm:$0xf] %vm1336_vm2, %v1561_v23 }
 0x2a3 PF: > { %s17_s30 = sadd.s32 1, %s1823_s30   ;;  %s2168_s22 = sld [smem:[#allocation4_spill]] }
 0x2a4   : > { %p14_p0 = scmp.ge.s32.totalorder %s17_s30, 11   ;;  %s2169_s24 = smov %s1803_s25 }
 0x2a5   : > { %s2170_s25 = smov %s1918_s14  ;;  %s2171_s26 = smov %s1815_s28 }
 0x2a6   : > { %s2172_s27 = smov %s1819_s29  ;;  %s2173_s28 = smov %s2176_s8 }
 0x2a7   :  { %16 = sbr.rel (!%p14_p0) target bundleno = 6 (0x6), region = 141 }
 0x2a9   : > { %s2174_s29 = smov %s2168_s22 }

// kernel: graphsage_forward.7
= control target key start
LH: loop header
LB: loop body
LE: loop exit
PB: predicated region body
PF: predicated region fallthrough
CT: control target
= control target key end

     0   :  { %s1507_s24 = smov 0   ;;  %s1794_s0 = inlined_call_operand.vmem [shape: bf16[1024,64], index: 0, kind: input, shape index: {}]   ;;  %s1795_s1 = inlined_call_operand.vmem [shape: bf16[1024,64], index: 1, kind: input, shape index: {}]   ;;  %s1796_s2 = inlined_call_operand.vmem [shape: f32[1,64], index: 2, kind: input, shape index: {}]   ;;  %s1797_s3 = inlined_call_operand.vmem [shape: bf16[64,32], index: 3, kind: input, shape index: {}]   ;;  %s1798_s4 = inlined_call_operand.vmem [shape: f32[1,32], index: 4, kind: input, shape index: {}]   ;;  %s1799_s5 = inlined_call_operand.vmem [shape: bf16[32,8], index: 5, kind: input, shape index: {}]   ;;  %s1800_s6 = inlined_call_operand.vmem [shape: f32[1,8], index: 6, kind: input, shape index: {}]   ;;  %s1801_s7 = inlined_call_operand.vmem [shape: f32[1024,8], index: 7, kind: output, shape index: {}]  }
   0x1 LB: > { %s1119_s25 = sadd.s32 4294967295, %s1465_s24   ;;  %p1123_p0 = scmp.ge.s32.totalorder %s1465_s24, 1  ;;  %s1465_s24 = sphi %s1507_s24, %s17_s24  }
   0x2   : > { %p249_p1 = scmp.lt.s32.totalorder %s1465_s24, 5 }
   0x4   : > { %p250_p2 = pnand %p1123_p0, %p249_p1 }
   0x5   : > { %s1124_s28 = sshll.u32 (!%p250_p2), %s1119_s25, 5 }
   0x6   : > { %253 = sbr.rel (%p250_p2) target bundleno = 490 (0x1ea), region = 48  ;;  %p287_p3 = scmp.lt.s32.totalorder (!%p250_p2), %s1124_s28, 127 }
   0xb   : > { %v1453_v0 = vld [vmem:[%s1797_s3 + $0x18] sm:$0xff]   ;;  %v1454_v1 = vld [vmem:[%s1797_s3 + $0x10] sm:$0xff]   ;;  %s1803_s28 = smov (!%p287_p3, %s1124_s28), 127  ;;  %v1455_v2 = vld [vmem:[%s1797_s3 + $0x8] sm:$0xff]   ;;  %vm559_vm0 = vcmask 523264   ;;  %vm808_vm1 = vcmask 261120  }
   0xc   : > { %1369 = vmatprep.subr.bf16.mxu0 %v1453_v0  ;;  %s1125_s10 = sshll.u32 %s1803_s28, 2  ;;  %v1456_v3 = vld [vmem:[%s1797_s3] sm:$0xff]   ;;  %s1129_s29 = sshll.u32 %s1803_s28, 3  ;;  %vm1018_vm2 = vcmask 64512  }
   0xd   : > { %1370 = vmatpush3.bf16.msra.mxu0 %v1453_v0  ;;  %s1533_s15 = scalar_lea.vmem %s1794_s0, %s1125_s10  ;;  %s1538_s18 = scalar_lea.vmem %s1795_s1, %s1125_s10  ;;  %v1549_v14 = vld [vmem:[%s1796_s2] ss:$0 sm:$0xff] }
   0xe   : > { %1371 = vmatprep.subr.bf16.mxu0 %v1454_v1  ;;  %v1174_v4 = vld [vmem:[%s1533_s15] sm:$0xff]   ;;  %v1301_v6 = vld [vmem:[%s1533_s15 + $0x8] sm:$0xff]   ;;  %v1302_v12 = vld [vmem:[%s1533_s15 + $0x10] sm:$0xff]   ;;  %s1693_s11 = scalar_lea.vmem %s1801_s7, %s1129_s29 }
   0xf   : > { %v1238_v5 = vld [vmem:[%s1538_s18] sm:$0xff]   ;;  %v1175_v7 = vunpack.c.l.bf16 %v1174_v4  ;;  %v1176_v8 = vunpack.c.h.bf16 %v1174_v4  ;;  %v1316_v11 = vld [vmem:[%s1538_s18 + $0x8] sm:$0xff]   ;;  %v1317_v13 = vld [vmem:[%s1538_s18 + $0x10] sm:$0xff]   ;;  %v1179_v15 = vunpack.c.l.bf16 %v1301_v6  ;;  %v1180_v16 = vunpack.c.h.bf16 %v1301_v6 }
  0x10   : > { %v1239_v9 = vunpack.c.l.bf16 %v1238_v5  ;;  %v1240_v10 = vunpack.c.h.bf16 %v1238_v5  ;;  %v1243_v17 = vunpack.c.l.bf16 %v1316_v11  ;;  %v1244_v18 = vunpack.c.h.bf16 %v1316_v11  ;;  %v1303_v19 = vld [vmem:[%s1533_s15 + $0x18] sm:$0xff]   ;;  %v1304_v29 = vld [vmem:[%s1533_s15 + $0x20] sm:$0xff]   ;;  %v1305_v43 = vld [vmem:[%s1533_s15 + $0x28] sm:$0xff]  }
  0x11   : > { %1372 = vmatpush3.bf16.msra.mxu0 %v1454_v1  ;;  %v1183_v22 = vunpack.c.l.bf16 %v1302_v12  ;;  %v1184_v23 = vunpack.c.h.bf16 %v1302_v12  ;;  %v1247_v26 = vunpack.c.l.bf16 %v1317_v13  ;;  %v1248_v27 = vunpack.c.h.bf16 %v1317_v13  ;;  %v1318_v28 = vld [vmem:[%s1538_s18 + $0x18] sm:$0xff]   ;;  %v1319_v38 = vld [vmem:[%s1538_s18 + $0x20] sm:$0xff]   ;;  %v1320_v44 = vld [vmem:[%s1538_s18 + $0x28] sm:$0xff]  }
  0x12   : > { %1373 = vmatprep.subr.bf16.mxu0 %v1455_v2  ;;  %v433_v20 = vadd.f32 %v1239_v9, %v1175_v7  ;;  %v434_v21 = vadd.f32 %v1240_v10, %v1176_v8  ;;  %v435_v24 = vadd.f32 %v1243_v17, %v1179_v15  ;;  %v436_v25 = vadd.f32 %v1244_v18, %v1180_v16  ;;  %v1306_v53 = vld [vmem:[%s1533_s15 + $0x30] sm:$0xff]   ;;  %v1307_v9 = vld [vmem:[%s1533_s15 + $0x38] sm:$0xff]   ;;  %v1308_v15 = vld [vmem:[%s1533_s15 + $0x40] sm:$0xff]  }
  0x13   : > { %v1187_v32 = vunpack.c.l.bf16 %v1303_v19  ;;  %v1188_v33 = vunpack.c.h.bf16 %v1303_v19  ;;  %v437_v36 = vadd.f32 %v1247_v26, %v1183_v22  ;;  %v438_v37 = vadd.f32 %v1248_v27, %v1184_v23  ;;  %v1321_v58 = vld [vmem:[%s1538_s18 + $0x30] sm:$0xff]   ;;  %v1322_v10 = vld [vmem:[%s1538_s18 + $0x38] sm:$0xff]   ;;  %v1323_v16 = vld [vmem:[%s1538_s18 + $0x40] sm:$0xff]  }
  0x14   : > { %v472_v30 = vadd.f32 %v1549_v14, %v433_v20  ;;  %v473_v31 = vadd.f32 %v1549_v14, %v434_v21  ;;  %v474_v34 = vadd.f32 %v1549_v14, %v435_v24  ;;  %v475_v35 = vadd.f32 %v1549_v14, %v436_v25 }
  0x15   : > { %1374 = vmatpush3.bf16.msra.mxu0 %v1455_v2  ;;  %v1251_v40 = vunpack.c.l.bf16 %v1318_v28  ;;  %v1252_v41 = vunpack.c.h.bf16 %v1318_v28  ;;  %v1191_v42 = vunpack.c.l.bf16 %v1304_v29  ;;  %v476_v46 = vadd.f32 %v1549_v14, %v437_v36  ;;  %v1324_v36 = vld [vmem:[%s1538_s18 + $0x48] sm:$0xff]  }
  0x16   : > { %1375 = vmatprep.subr.bf16.mxu0 %v1456_v3  ;;  %v513_v39 = vpack.c.bf16 %v473_v31, %v472_v30  ;;  %v514_v45 = vpack.c.bf16 %v475_v35, %v474_v34  ;;  %v477_v47 = vadd.f32 %v1549_v14, %v438_v37  ;;  %v1192_v48 = vunpack.c.h.bf16 %v1304_v29  ;;  %v1310_v37 = vld [vmem:[%s1533_s15 + $0x50] sm:$0xff]  }
  0x17   : > { %v439_v49 = vadd.f32 %v1251_v40, %v1187_v32  ;;  %v440_v50 = vadd.f32 %v1252_v41, %v1188_v33  ;;  %v1255_v51 = vunpack.c.l.bf16 %v1319_v38  ;;  %v1256_v52 = vunpack.c.h.bf16 %v1319_v38  ;;  %v1309_v33 = vld [vmem:[%s1533_s15 + $0x48] sm:$0xff]   ;;  %v1325_v38 = vld [vmem:[%s1538_s18 + $0x50] sm:$0xff]  }
  0x18   : > { %1377 = vmatprep.mubr.msk.bf16.mxu0 %vm559_vm0, %v513_v39  ;;  %v515_v54 = vpack.c.bf16 %v477_v47, %v476_v46  ;;  %v1195_v55 = vunpack.c.l.bf16 %v1305_v43  ;;  %v1196_v56 = vunpack.c.h.bf16 %v1305_v43  ;;  %v1259_v57 = vunpack.c.l.bf16 %v1320_v44 }
  0x19   : > { %1376 = vmatpush3.bf16.msra.mxu0 %v1456_v3  ;;  %v478_v59 = vadd.f32 %v1549_v14, %v439_v49  ;;  %v479_v60 = vadd.f32 %v1549_v14, %v440_v50  ;;  %v441_v61 = vadd.f32 %v1255_v51, %v1191_v42  ;;  %v442_v62 = vadd.f32 %v1256_v52, %v1192_v48 }
  0x1a   : > { %v1260_v63 = vunpack.c.h.bf16 %v1320_v44  ;;  %v1199_v0 = vunpack.c.l.bf16 %v1306_v53  ;;  %v1200_v1 = vunpack.c.h.bf16 %v1306_v53  ;;  %v1263_v4 = vunpack.c.l.bf16 %v1321_v58 }
  0x1b   : > { %v480_v2 = vadd.f32 %v1549_v14, %v441_v61  ;;  %v481_v3 = vadd.f32 %v1549_v14, %v442_v62  ;;  %v1264_v5 = vunpack.c.h.bf16 %v1321_v58  ;;  %v516_v6 = vpack.c.bf16 %v479_v60, %v478_v59  ;;  %v1312_v59 = vld [vmem:[%s1533_s15 + $0x60] sm:$0xff]  }
  0x1c   : > { %1378 = vmatmul.mubr.msk.bf16.vlgmr.msra.gmra.mxu0 %vm559_vm0, %v514_v45  ;;  %v443_v7 = vadd.f32 %v1259_v57, %v1195_v55  ;;  %v444_v8 = vadd.f32 %v1260_v63, %v1196_v56  ;;  %v445_v12 = vadd.f32 %v1263_v4, %v1199_v0  ;;  %v1203_v17 = vunpack.c.l.bf16 %v1307_v9  ;;  %v1326_v55 = vld [vmem:[%s1538_s18 + $0x58] sm:$0xff]   ;;  %v1327_v60 = vld [vmem:[%s1538_s18 + $0x60] sm:$0xff]  }
  0x1d   : > { %1381 = vmatprep.mubr.msk.bf16.mxu0 %vm559_vm0, %v515_v54  ;;  %v517_v11 = vpack.c.bf16 %v481_v3, %v480_v2  ;;  %v446_v13 = vadd.f32 %v1264_v5, %v1200_v1  ;;  %v1204_v18 = vunpack.c.h.bf16 %v1307_v9  ;;  %v1267_v19 = vunpack.c.l.bf16 %v1322_v10  ;;  %v1311_v54 = vld [vmem:[%s1533_s15 + $0x58] sm:$0xff]  }
  0x1e   : > { %v1268_v20 = vunpack.c.h.bf16 %v1322_v10  ;;  %v482_v21 = vadd.f32 %v1549_v14, %v443_v7  ;;  %v483_v22 = vadd.f32 %v1549_v14, %v444_v8  ;;  %v1207_v23 = vunpack.c.l.bf16 %v1308_v15 }
  0x1f   : > { %v1271_v24 = vunpack.c.l.bf16 %v1323_v16  ;;  %v484_v25 = vadd.f32 %v1549_v14, %v445_v12  ;;  %v485_v26 = vadd.f32 %v1549_v14, %v446_v13  ;;  %v1208_v27 = vunpack.c.h.bf16 %v1308_v15  ;;  %v1313_v13 = vld [vmem:[%s1533_s15 + $0x68] sm:$0xff]  }
  0x20   : > { %v1272_v28 = vunpack.c.h.bf16 %v1323_v16  ;;  %v447_v29 = vadd.f32 %v1267_v19, %v1203_v17  ;;  %v448_v30 = vadd.f32 %v1268_v20, %v1204_v18  ;;  %v518_v31 = vpack.c.bf16 %v483_v22, %v482_v21  ;;  %v1328_v17 = vld [vmem:[%s1538_s18 + $0x68] sm:$0xff]   ;;  %v1314_v18 = vld [vmem:[%s1533_s15 + $0x70] sm:$0xff]  }
  0x21   : > { %v449_v32 = vadd.f32 %v1271_v24, %v1207_v23  ;;  %v519_v34 = vpack.c.bf16 %v485_v26, %v484_v25  ;;  %v1211_v41 = vunpack.c.l.bf16 %v1309_v33  ;;  %v1212_v42 = vunpack.c.h.bf16 %v1309_v33  ;;  %v1329_v19 = vld [vmem:[%s1538_s18 + $0x70] sm:$0xff]  }
  0x22   : > { %v450_v35 = vadd.f32 %v1272_v28, %v1208_v27  ;;  %v486_v39 = vadd.f32 %v1549_v14, %v447_v29  ;;  %v487_v40 = vadd.f32 %v1549_v14, %v448_v30  ;;  %v1275_v44 = vunpack.c.l.bf16 %v1324_v36 }
  0x23   : > { %v488_v43 = vadd.f32 %v1549_v14, %v449_v32  ;;  %v1276_v45 = vunpack.c.h.bf16 %v1324_v36  ;;  %v1215_v46 = vunpack.c.l.bf16 %v1310_v37  ;;  %v1216_v48 = vunpack.c.h.bf16 %v1310_v37 }
  0x24   : > { %1382 = vmatmul.mubr.msk.bf16.gmra.mxu0 %vm559_vm0, %v516_v6  ;;  %v489_v47 = vadd.f32 %v1549_v14, %v450_v35  ;;  %v1279_v49 = vunpack.c.l.bf16 %v1325_v38  ;;  %v1280_v50 = vunpack.c.h.bf16 %v1325_v38  ;;  %v520_v51 = vpack.c.bf16 %v487_v40, %v486_v39  ;;  %v1315_v35 = vld [vmem:[%s1533_s15 + $0x78] sm:$0xff]  }
  0x25   : > { %1385 = vmatprep.mubr.msk.bf16.mxu0 %vm559_vm0, %v517_v11  ;;  %v451_v52 = vadd.f32 %v1275_v44, %v1211_v41  ;;  %v452_v53 = vadd.f32 %v1276_v45, %v1212_v42  ;;  %v1219_v61 = vunpack.c.l.bf16 %v1311_v54  ;;  %v1220_v62 = vunpack.c.h.bf16 %v1311_v54  ;;  %v1330_v39 = vld [vmem:[%s1538_s18 + $0x78] sm:$0xff]  }
  0x26   : > { %v521_v56 = vpack.c.bf16 %v489_v47, %v488_v43  ;;  %v453_v57 = vadd.f32 %v1279_v49, %v1215_v46  ;;  %v454_v58 = vadd.f32 %v1280_v50, %v1216_v48  ;;  %v1283_v63 = vunpack.c.l.bf16 %v1326_v55 }
  0x27   : > { %v1284_v0 = vunpack.c.h.bf16 %v1326_v55  ;;  %v490_v1 = vadd.f32 %v1549_v14, %v451_v52  ;;  %v491_v2 = vadd.f32 %v1549_v14, %v452_v53  ;;  %v1223_v3 = vunpack.c.l.bf16 %v1312_v59  ;;  %v1457_v55 = vld [vmem:[%s1799_s5 + $0x8] sm:$0xff]  }
  0x28   : > { %v1287_v4 = vunpack.c.l.bf16 %v1327_v60  ;;  %v492_v5 = vadd.f32 %v1549_v14, %v453_v57  ;;  %v493_v6 = vadd.f32 %v1549_v14, %v454_v58  ;;  %v1224_v7 = vunpack.c.h.bf16 %v1312_v59  ;;  %1409 = vmatprep.subr.bf16.mxu1 %v1457_v55  ;;  %v1634_v59 = vld [vmem:[%s1798_s4] ss:$0 sm:$0xff] }
  0x29   : > { %v1288_v8 = vunpack.c.h.bf16 %v1327_v60  ;;  %v455_v9 = vadd.f32 %v1283_v63, %v1219_v61  ;;  %v456_v10 = vadd.f32 %v1284_v0, %v1220_v62  ;;  %v522_v11 = vpack.c.bf16 %v491_v2, %v490_v1  ;;  %1410 = vmatpush3.bf16.msra.mxu1 %v1457_v55 }
  0x2a   : > { %v457_v12 = vadd.f32 %v1287_v4, %v1223_v3  ;;  %v523_v15 = vpack.c.bf16 %v493_v6, %v492_v5  ;;  %v1227_v22 = vunpack.c.l.bf16 %v1313_v13  ;;  %v1228_v23 = vunpack.c.h.bf16 %v1313_v13 }
  0x2b   : > { %v458_v16 = vadd.f32 %v1288_v8, %v1224_v7  ;;  %v494_v20 = vadd.f32 %v1549_v14, %v455_v9  ;;  %v495_v21 = vadd.f32 %v1549_v14, %v456_v10  ;;  %v1291_v25 = vunpack.c.l.bf16 %v1328_v17 }
  0x2c   : > { %1386 = vmatmul.mubr.msk.bf16.gmra.mxu0 %vm559_vm0, %v518_v31  ;;  %v496_v24 = vadd.f32 %v1549_v14, %v457_v12  ;;  %v1292_v26 = vunpack.c.h.bf16 %v1328_v17  ;;  %v1231_v27 = vunpack.c.l.bf16 %v1314_v18  ;;  %v1232_v29 = vunpack.c.h.bf16 %v1314_v18 }
  0x2d   : > { %1389 = vmatprep.mubr.msk.bf16.mxu0 %vm559_vm0, %v519_v34  ;;  %v497_v28 = vadd.f32 %v1549_v14, %v458_v16  ;;  %v1295_v30 = vunpack.c.l.bf16 %v1329_v19  ;;  %v1296_v31 = vunpack.c.h.bf16 %v1329_v19  ;;  %v524_v32 = vpack.c.bf16 %v495_v21, %v494_v20 }
  0x2e   : > { %v459_v33 = vadd.f32 %v1291_v25, %v1227_v22  ;;  %v460_v34 = vadd.f32 %v1292_v26, %v1228_v23  ;;  %v1235_v40 = vunpack.c.l.bf16 %v1315_v35  ;;  %v1236_v41 = vunpack.c.h.bf16 %v1315_v35 }
  0x2f   : > { %v525_v36 = vpack.c.bf16 %v497_v28, %v496_v24  ;;  %v461_v37 = vadd.f32 %v1295_v30, %v1231_v27  ;;  %v462_v38 = vadd.f32 %v1296_v31, %v1232_v29  ;;  %v1299_v44 = vunpack.c.l.bf16 %v1330_v39 }
  0x30   : > { %v498_v42 = vadd.f32 %v1549_v14, %v459_v33  ;;  %v499_v43 = vadd.f32 %v1549_v14, %v460_v34  ;;  %v1300_v45 = vunpack.c.h.bf16 %v1330_v39 }
  0x31   : > { %v500_v46 = vadd.f32 %v1549_v14, %v461_v37  ;;  %v501_v47 = vadd.f32 %v1549_v14, %v462_v38  ;;  %v463_v49 = vadd.f32 %v1299_v44, %v1235_v40 }
  0x32   : > { %v526_v48 = vpack.c.bf16 %v499_v43, %v498_v42  ;;  %v464_v50 = vadd.f32 %v1300_v45, %v1236_v41 }
  0x33   : > { %v502_v52 = vadd.f32 %v1549_v14, %v463_v49 }
  0x34   : > { %1390 = vmatmul.mubr.msk.bf16.gmra.mxu0 %vm559_vm0, %v520_v51  ;;  %v527_v51 = vpack.c.bf16 %v501_v47, %v500_v46  ;;  %v503_v53 = vadd.f32 %v1549_v14, %v464_v50 }
  0x35   : > { %1393 = vmatprep.mubr.msk.bf16.mxu0 %vm559_vm0, %v521_v56  ;;  %v1458_v56 = vld [vmem:[%s1799_s5] sm:$0xff]  }
  0x36   : > { %v528_v54 = vpack.c.bf16 %v503_v53, %v502_v52  ;;  %1411 = vmatprep.subr.bf16.mxu1 %v1458_v56 }
  0x37   : > { %1412 = vmatpush3.bf16.msra.mxu1 %v1458_v56 }
  0x3c   : > { %1394 = vmatmul.mubr.msk.bf16.gmra.mxu0 %vm559_vm0, %v522_v11 }
  0x3d   : > { %1397 = vmatprep.mubr.msk.bf16.mxu0 %vm559_vm0, %v523_v15 }
  0x44   : > { %1398 = vmatmul.mubr.msk.bf16.gmra.mxu0 %vm559_vm0, %v524_v32 }
  0x45   : > { %1401 = vmatprep.mubr.msk.bf16.mxu0 %vm559_vm0, %v525_v36 }
  0x4c   : > { %1402 = vmatmul.mubr.msk.bf16.gmra.mxu0 %vm559_vm0, %v526_v48 }
  0x4d   : > { %1405 = vmatprep.mubr.msk.bf16.mxu0 %vm559_vm0, %v527_v51 }
  0x54   : > { %1406 = vmatmul.mubr.msk.bf16.gmra.mxu0 %vm559_vm0, %v528_v54 }
  0xdc   : > { %v1379_v57 = vpop.f32.mrf.mxu0 }
  0xdd   : > { %v651_v0 = vadd.f32 %v1379_v57, %v1634_v59 }
  0xde   : > { %v642_v58 = vpop.f32.mrf.mxu0 }
  0xdf   : > { %v643_v62 = vadd.f32 %v1634_v59, %v642_v58 }
  0xe0   : > { %v1380_v14 = vpop.f32.mrf.mxu0 }
  0xe1   : > { %v654_v60 = vadd.f32 %v1380_v14, %v1634_v59 }
  0xe2   : > { %v645_v61 = vpop.f32.mrf.mxu0 }
  0xe3   : > { %v646_v63 = vadd.f32 %v1634_v59, %v645_v61  ;;  %v775_v3 = vpack.c.bf16 %v654_v60, %v651_v0 }
  0xe4   : > { %v1383_v1 = vpop.f32.mrf.mxu0 }
  0xe5   : > { %v774_v2 = vpack.c.bf16 %v646_v63, %v643_v62  ;;  %v667_v10 = vadd.f32 %v1383_v1, %v1634_v59 }
  0xe6   : > { %v658_v4 = vpop.f32.mrf.mxu0 }
  0xe7   : > { %1413 = vmatprep.mubr.msk.bf16.mxu1 %vm808_vm1, %v774_v2  ;;  %v659_v8 = vadd.f32 %v1634_v59, %v658_v4 }
  0xe8   : > { %v1384_v5 = vpop.f32.mrf.mxu0  ;;  %1414 = vmatmul.mubr.msk.bf16.vlgmr.msra.gmra.mxu1 %vm808_vm1, %v775_v3 }
  0xe9   : > { %v670_v6 = vadd.f32 %v1384_v5, %v1634_v59 }
  0xea   : > { %v661_v7 = vpop.f32.mrf.mxu0 }
  0xeb   : > { %v662_v9 = vadd.f32 %v1634_v59, %v661_v7  ;;  %v777_v13 = vpack.c.bf16 %v670_v6, %v667_v10  ;;  %v1688_v10 = vld [vmem:[%s1800_s6] ss:$0 sm:$0xff] }
  0xec   : > { %v1387_v11 = vpop.f32.mrf.mxu0 }
  0xed   : > { %v776_v12 = vpack.c.bf16 %v662_v9, %v659_v8  ;;  %v683_v21 = vadd.f32 %v1387_v11, %v1634_v59 }
  0xee   : > { %v674_v15 = vpop.f32.mrf.mxu0 }
  0xef   : > { %1417 = vmatprep.mubr.msk.bf16.mxu1 %vm808_vm1, %v776_v12  ;;  %v675_v19 = vadd.f32 %v1634_v59, %v674_v15 }
  0xf0   : > { %v1388_v16 = vpop.f32.mrf.mxu0  ;;  %1418 = vmatmul.mubr.msk.bf16.gmra.mxu1 %vm808_vm1, %v777_v13 }
  0xf1   : > { %v686_v17 = vadd.f32 %v1388_v16, %v1634_v59 }
  0xf2   : > { %v677_v18 = vpop.f32.mrf.mxu0 }
  0xf3   : > { %v678_v20 = vadd.f32 %v1634_v59, %v677_v18  ;;  %v779_v24 = vpack.c.bf16 %v686_v17, %v683_v21 }
  0xf4   : > { %v1391_v22 = vpop.f32.mrf.mxu0 }
  0xf5   : > { %v778_v23 = vpack.c.bf16 %v678_v20, %v675_v19  ;;  %v699_v31 = vadd.f32 %v1391_v22, %v1634_v59 }
  0xf6   : > { %v690_v25 = vpop.f32.mrf.mxu0 }
  0xf7   : > { %1421 = vmatprep.mubr.msk.bf16.mxu1 %vm808_vm1, %v778_v23  ;;  %v691_v29 = vadd.f32 %v1634_v59, %v690_v25 }
  0xf8   : > { %v1392_v26 = vpop.f32.mrf.mxu0  ;;  %1422 = vmatmul.mubr.msk.bf16.gmra.mxu1 %vm808_vm1, %v779_v24 }
  0xf9   : > { %v702_v27 = vadd.f32 %v1392_v26, %v1634_v59 }
  0xfa   : > { %v693_v28 = vpop.f32.mrf.mxu0 }
  0xfb   : > { %v694_v30 = vadd.f32 %v1634_v59, %v693_v28  ;;  %v781_v34 = vpack.c.bf16 %v702_v27, %v699_v31 }
  0xfc   : > { %v1395_v32 = vpop.f32.mrf.mxu0 }
  0xfd   : > { %v780_v33 = vpack.c.bf16 %v694_v30, %v691_v29  ;;  %v715_v41 = vadd.f32 %v1395_v32, %v1634_v59 }
  0xfe   : > { %v706_v35 = vpop.f32.mrf.mxu0 }
  0xff   : > { %1425 = vmatprep.mubr.msk.bf16.mxu1 %vm808_vm1, %v780_v33  ;;  %v707_v39 = vadd.f32 %v1634_v59, %v706_v35 }
 0x100   : > { %v1396_v36 = vpop.f32.mrf.mxu0  ;;  %1426 = vmatmul.mubr.msk.bf16.gmra.mxu1 %vm808_vm1, %v781_v34 }
 0x101   : > { %v718_v37 = vadd.f32 %v1396_v36, %v1634_v59 }
 0x102   : > { %v709_v38 = vpop.f32.mrf.mxu0 }
 0x103   : > { %v710_v40 = vadd.f32 %v1634_v59, %v709_v38  ;;  %v783_v44 = vpack.c.bf16 %v718_v37, %v715_v41 }
 0x104   : > { %v1399_v42 = vpop.f32.mrf.mxu0 }
 0x105   : > { %v782_v43 = vpack.c.bf16 %v710_v40, %v707_v39  ;;  %v731_v51 = vadd.f32 %v1399_v42, %v1634_v59 }
 0x106   : > { %v722_v45 = vpop.f32.mrf.mxu0 }
 0x107   : > { %1429 = vmatprep.mubr.msk.bf16.mxu1 %vm808_vm1, %v782_v43  ;;  %v723_v49 = vadd.f32 %v1634_v59, %v722_v45 }
 0x108   : > { %v1400_v46 = vpop.f32.mrf.mxu0  ;;  %1430 = vmatmul.mubr.msk.bf16.gmra.mxu1 %vm808_vm1, %v783_v44 }
 0x109   : > { %v734_v47 = vadd.f32 %v1400_v46, %v1634_v59 }
 0x10a   : > { %v725_v48 = vpop.f32.mrf.mxu0 }
 0x10b   : > { %v726_v50 = vadd.f32 %v1634_v59, %v725_v48  ;;  %v785_v54 = vpack.c.bf16 %v734_v47, %v731_v51 }
 0x10c   : > { %v1403_v52 = vpop.f32.mrf.mxu0 }
 0x10d   : > { %v784_v53 = vpack.c.bf16 %v726_v50, %v723_v49  ;;  %v747_v61 = vadd.f32 %v1403_v52, %v1634_v59 }
 0x10e   : > { %v738_v55 = vpop.f32.mrf.mxu0 }
 0x10f   : > { %1433 = vmatprep.mubr.msk.bf16.mxu1 %vm808_vm1, %v784_v53  ;;  %v739_v14 = vadd.f32 %v1634_v59, %v738_v55 }
 0x110   : > { %v1404_v56 = vpop.f32.mrf.mxu0  ;;  %1434 = vmatmul.mubr.msk.bf16.gmra.mxu1 %vm808_vm1, %v785_v54 }
 0x111   : > { %v750_v57 = vadd.f32 %v1404_v56, %v1634_v59 }
 0x112   : > { %v741_v58 = vpop.f32.mrf.mxu0 }
 0x113   : > { %v742_v60 = vadd.f32 %v1634_v59, %v741_v58  ;;  %v787_v0 = vpack.c.bf16 %v750_v57, %v747_v61 }
 0x114   : > { %v1407_v62 = vpop.f32.mrf.mxu0 }
 0x115   : > { %v786_v63 = vpack.c.bf16 %v742_v60, %v739_v14  ;;  %v763_v7 = vadd.f32 %v1407_v62, %v1634_v59 }
 0x116   : > { %v754_v1 = vpop.f32.mrf.mxu0 }
 0x117   : > { %1437 = vmatprep.mubr.msk.bf16.mxu1 %vm808_vm1, %v786_v63  ;;  %v755_v5 = vadd.f32 %v1634_v59, %v754_v1 }
 0x118   : > { %v1408_v2 = vpop.f32.mrf.mxu0  ;;  %1438 = vmatmul.mubr.msk.bf16.gmra.mxu1 %vm808_vm1, %v787_v0 }
 0x119   : > { %v766_v3 = vadd.f32 %v1408_v2, %v1634_v59 }
 0x11a   : > { %v757_v4 = vpop.f32.mrf.mxu0 }
 0x11b   : > { %v758_v6 = vadd.f32 %v1634_v59, %v757_v4  ;;  %v789_v9 = vpack.c.bf16 %v766_v3, %v763_v7 }
 0x11d   : > { %v788_v8 = vpack.c.bf16 %v758_v6, %v755_v5 }
 0x11f   : > { %1441 = vmatprep.mubr.msk.bf16.mxu1 %vm808_vm1, %v788_v8 }
 0x120   : > { %1442 = vmatmul.mubr.msk.bf16.gmra.mxu1 %vm808_vm1, %v789_v9 }
 0x1a8   : > { %v1415_v59 = vpop.f32.mrf.mxu1 }
 0x1a9   : > { %v900_v11 = vadd.f32 %v1415_v59, %v1688_v10 }
 0x1aa   : > { %v891_v12 = vpop.f32.mrf.mxu1 }
 0x1ab   : > { %1021 = vst.msk [vmem:[%s1693_s11 + $0x10] sm:$0xff] %vm1018_vm2, %v900_v11  ;;  %v892_v13 = vadd.f32 %v1688_v10, %v891_v12 }
 0x1ac   : > { %v1416_v15 = vpop.f32.mrf.mxu1 }
 0x1ad   : > { %1019 = vst.msk [vmem:[%s1693_s11] sm:$0xff] %vm1018_vm2, %v892_v13  ;;  %v903_v16 = vadd.f32 %v1416_v15, %v1688_v10 }
 0x1ae   : > { %v894_v17 = vpop.f32.mrf.mxu1 }
 0x1af   : > { %1022 = vst.msk [vmem:[%s1693_s11 + $0x18] sm:$0xff] %vm1018_vm2, %v903_v16  ;;  %v895_v18 = vadd.f32 %v1688_v10, %v894_v17 }
 0x1b0   : > { %v1419_v19 = vpop.f32.mrf.mxu1 }
 0x1b1   : > { %1020 = vst.msk [vmem:[%s1693_s11 + $0x8] sm:$0xff] %vm1018_vm2, %v895_v18  ;;  %v916_v20 = vadd.f32 %v1419_v19, %v1688_v10 }
 0x1b2   : > { %v907_v21 = vpop.f32.mrf.mxu1 }
 0x1b3   : > { %1025 = vst.msk [vmem:[%s1693_s11 + $0x30] sm:$0xff] %vm1018_vm2, %v916_v20  ;;  %v908_v22 = vadd.f32 %v1688_v10, %v907_v21 }
 0x1b4   : > { %v1420_v23 = vpop.f32.mrf.mxu1 }
 0x1b5   : > { %1023 = vst.msk [vmem:[%s1693_s11 + $0x20] sm:$0xff] %vm1018_vm2, %v908_v22  ;;  %v919_v24 = vadd.f32 %v1420_v23, %v1688_v10 }
 0x1b6   : > { %v910_v25 = vpop.f32.mrf.mxu1 }
 0x1b7   : > { %1026 = vst.msk [vmem:[%s1693_s11 + $0x38] sm:$0xff] %vm1018_vm2, %v919_v24  ;;  %v911_v26 = vadd.f32 %v1688_v10, %v910_v25 }
 0x1b8   : > { %v1423_v27 = vpop.f32.mrf.mxu1 }
 0x1b9   : > { %1024 = vst.msk [vmem:[%s1693_s11 + $0x28] sm:$0xff] %vm1018_vm2, %v911_v26  ;;  %v932_v28 = vadd.f32 %v1423_v27, %v1688_v10 }
 0x1ba   : > { %v923_v29 = vpop.f32.mrf.mxu1 }
 0x1bb   : > { %1029 = vst.msk [vmem:[%s1693_s11 + $0x50] sm:$0xff] %vm1018_vm2, %v932_v28  ;;  %v924_v30 = vadd.f32 %v1688_v10, %v923_v29 }
 0x1bc   : > { %v1424_v31 = vpop.f32.mrf.mxu1 }
 0x1bd   : > { %1027 = vst.msk [vmem:[%s1693_s11 + $0x40] sm:$0xff] %vm1018_vm2, %v924_v30  ;;  %v935_v32 = vadd.f32 %v1424_v31, %v1688_v10 }
 0x1be   : > { %v926_v33 = vpop.f32.mrf.mxu1 }
 0x1bf   : > { %1030 = vst.msk [vmem:[%s1693_s11 + $0x58] sm:$0xff] %vm1018_vm2, %v935_v32  ;;  %v927_v34 = vadd.f32 %v1688_v10, %v926_v33 }
 0x1c0   : > { %v1427_v35 = vpop.f32.mrf.mxu1 }
 0x1c1   : > { %1028 = vst.msk [vmem:[%s1693_s11 + $0x48] sm:$0xff] %vm1018_vm2, %v927_v34  ;;  %v948_v36 = vadd.f32 %v1427_v35, %v1688_v10 }
 0x1c2   : > { %v939_v37 = vpop.f32.mrf.mxu1 }
 0x1c3   : > { %1033 = vst.msk [vmem:[%s1693_s11 + $0x70] sm:$0xff] %vm1018_vm2, %v948_v36  ;;  %v940_v38 = vadd.f32 %v1688_v10, %v939_v37 }
 0x1c4   : > { %v1428_v39 = vpop.f32.mrf.mxu1 }
 0x1c5   : > { %1031 = vst.msk [vmem:[%s1693_s11 + $0x60] sm:$0xff] %vm1018_vm2, %v940_v38  ;;  %v951_v40 = vadd.f32 %v1428_v39, %v1688_v10 }
 0x1c6   : > { %v942_v41 = vpop.f32.mrf.mxu1 }
 0x1c7   : > { %1034 = vst.msk [vmem:[%s1693_s11 + $0x78] sm:$0xff] %vm1018_vm2, %v951_v40  ;;  %v943_v42 = vadd.f32 %v1688_v10, %v942_v41 }
 0x1c8   : > { %v1431_v43 = vpop.f32.mrf.mxu1 }
 0x1c9   : > { %1032 = vst.msk [vmem:[%s1693_s11 + $0x68] sm:$0xff] %vm1018_vm2, %v943_v42  ;;  %v964_v44 = vadd.f32 %v1431_v43, %v1688_v10 }
 0x1ca   : > { %v955_v45 = vpop.f32.mrf.mxu1 }
 0x1cb   : > { %1037 = vst.msk [vmem:[%s1693_s11 + $0x90] sm:$0xff] %vm1018_vm2, %v964_v44  ;;  %v956_v46 = vadd.f32 %v1688_v10, %v955_v45 }
 0x1cc   : > { %v1432_v47 = vpop.f32.mrf.mxu1 }
 0x1cd   : > { %1035 = vst.msk [vmem:[%s1693_s11 + $0x80] sm:$0xff] %vm1018_vm2, %v956_v46  ;;  %v967_v48 = vadd.f32 %v1432_v47, %v1688_v10 }
 0x1ce   : > { %v958_v49 = vpop.f32.mrf.mxu1 }
 0x1cf   : > { %1038 = vst.msk [vmem:[%s1693_s11 + $0x98] sm:$0xff] %vm1018_vm2, %v967_v48  ;;  %v959_v50 = vadd.f32 %v1688_v10, %v958_v49 }
 0x1d0   : > { %v1435_v51 = vpop.f32.mrf.mxu1 }
 0x1d1   : > { %1036 = vst.msk [vmem:[%s1693_s11 + $0x88] sm:$0xff] %vm1018_vm2, %v959_v50  ;;  %v980_v52 = vadd.f32 %v1435_v51, %v1688_v10 }
 0x1d2   : > { %v971_v53 = vpop.f32.mrf.mxu1 }
 0x1d3   : > { %1041 = vst.msk [vmem:[%s1693_s11 + $0xb0] sm:$0xff] %vm1018_vm2, %v980_v52  ;;  %v972_v54 = vadd.f32 %v1688_v10, %v971_v53 }
 0x1d4   : > { %v1436_v55 = vpop.f32.mrf.mxu1 }
 0x1d5   : > { %1039 = vst.msk [vmem:[%s1693_s11 + $0xa0] sm:$0xff] %vm1018_vm2, %v972_v54  ;;  %v983_v56 = vadd.f32 %v1436_v55, %v1688_v10 }
 0x1d6   : > { %v974_v57 = vpop.f32.mrf.mxu1 }
 0x1d7   : > { %1042 = vst.msk [vmem:[%s1693_s11 + $0xb8] sm:$0xff] %vm1018_vm2, %v983_v56  ;;  %v975_v58 = vadd.f32 %v1688_v10, %v974_v57 }
 0x1d8   : > { %v1439_v14 = vpop.f32.mrf.mxu1 }
 0x1d9   : > { %1040 = vst.msk [vmem:[%s1693_s11 + $0xa8] sm:$0xff] %vm1018_vm2, %v975_v58  ;;  %v996_v60 = vadd.f32 %v1439_v14, %v1688_v10 }
 0x1da   : > { %v987_v61 = vpop.f32.mrf.mxu1 }
 0x1db   : > { %1045 = vst.msk [vmem:[%s1693_s11 + $0xd0] sm:$0xff] %vm1018_vm2, %v996_v60  ;;  %v988_v62 = vadd.f32 %v1688_v10, %v987_v61 }
 0x1dc   : > { %v1440_v63 = vpop.f32.mrf.mxu1 }
 0x1dd   : > { %1043 = vst.msk [vmem:[%s1693_s11 + $0xc0] sm:$0xff] %vm1018_vm2, %v988_v62  ;;  %v999_v0 = vadd.f32 %v1440_v63, %v1688_v10 }
 0x1de   : > { %v990_v1 = vpop.f32.mrf.mxu1 }
 0x1df   : > { %1046 = vst.msk [vmem:[%s1693_s11 + $0xd8] sm:$0xff] %vm1018_vm2, %v999_v0  ;;  %v991_v2 = vadd.f32 %v1688_v10, %v990_v1 }
 0x1e0   : > { %v1443_v3 = vpop.f32.mrf.mxu1 }
 0x1e1   : > { %1044 = vst.msk [vmem:[%s1693_s11 + $0xc8] sm:$0xff] %vm1018_vm2, %v991_v2  ;;  %v1012_v4 = vadd.f32 %v1443_v3, %v1688_v10 }
 0x1e2   : > { %v1003_v5 = vpop.f32.mrf.mxu1 }
 0x1e3   : > { %1049 = vst.msk [vmem:[%s1693_s11 + $0xf0] sm:$0xff] %vm1018_vm2, %v1012_v4  ;;  %v1004_v6 = vadd.f32 %v1688_v10, %v1003_v5 }
 0x1e4   : > { %v1444_v7 = vpop.f32.mrf.mxu1 }
 0x1e5   : > { %1047 = vst.msk [vmem:[%s1693_s11 + $0xe0] sm:$0xff] %vm1018_vm2, %v1004_v6  ;;  %v1015_v8 = vadd.f32 %v1444_v7, %v1688_v10 }
 0x1e6   : > { %v1006_v9 = vpop.f32.mrf.mxu1 }
 0x1e7   : > { %1050 = vst.msk [vmem:[%s1693_s11 + $0xf8] sm:$0xff] %vm1018_vm2, %v1015_v8  ;;  %v1007_v59 = vadd.f32 %v1688_v10, %v1006_v9 }
 0x1e9   : > { %1048 = vst.msk [vmem:[%s1693_s11 + $0xe8] sm:$0xff] %vm1018_vm2, %v1007_v59 }
 0x1ea PF: > { %s17_s24 = sadd.s32 1, %s1465_s24  }
 0x1eb   : > { %p14_p4 = scmp.ge.s32.totalorder %s17_s24, 6  }
 0x1ed   :  { %16 = sbr.rel (!%p14_p4) target bundleno = 1 (0x1), region = 81 }

</bundles_post_ra>
